<compile_context>
chip_gen: v5e
topology: v5e:2x2
jax: 0.10.0
libtpu: 0.0.40
codegen_flags: <defaults>
</compile_context>

<pallas_src>
import functools

import jax
import jax.numpy as jnp
from jax.experimental import pallas as pl
from jax.experimental.pallas import tpu as pltpu


def _fused_mlp_kernel(x_ref, w1_ref, b1_ref, w2_ref, b2_ref, o_ref, *,
                      approx_gelu):
    # x tile: (TM, D) f32 -> bf16 for the MXU; accumulate in f32.
    xb = x_ref[...].astype(w1_ref.dtype)
    h = jnp.dot(xb, w1_ref[...], preferred_element_type=jnp.float32)
    h = h + b1_ref[...]
    # tanh-GELU: transcendental runs on the EUP slot instead of a ~20-40-op
    # VPU erf polynomial -> kernel stays MXU-bound on v6e/v7x.
    h = jax.nn.gelu(h, approximate=approx_gelu)
    # Dropout(p=0.0) is identity -> no-op.
    hb = h.astype(w2_ref.dtype)
    o = jnp.dot(hb, w2_ref[...], preferred_element_type=jnp.float32)
    o_ref[...] = (o + b2_ref[...]).astype(o_ref.dtype)


def _pick_batch_tile(B, block_m):
    """Batch tile: multiple of 8 (f32 sublane), <= block_m, and small enough
    that the grid keeps >= 4 steps for large B (so v7x's 2 TCs each get >= 2
    pipelined steps).  For tiny B a single full-extent block is used."""
    if B <= 8:
        return B                      # block dim == full array dim: allowed
    return max(8, min(block_m, (B // 4) // 8 * 8))


@functools.partial(jax.jit, static_argnames=("block_m", "approx_gelu"))
def pretrain_forward(x, w1, b1, w2, b2, *, block_m=1024, approx_gelu=True):
    """x: (B, F, P, C) float32 with C == 2.  Returns (B, F, P, 2) float32."""
    B, F, P, C = x.shape
    if C != 2:
        # The original module's .view(B, F, P, 2) hard-codes 2 output channels.
        raise ValueError("pretrain expects in_channels == 2")
    D = F * P * C
    H = w1.shape[1]

    x2d = x.reshape(B, D)  # same as torch x.view(B, -1)

    tm = _pick_batch_tile(B, block_m)
    grid = (pl.cdiv(B, tm),)   # partial edge block handled by Pallas (no pad)

    # Stream weights as bf16 (halves HBM bytes, native MXU dtype); biases stay
    # f32 (added to the f32 accumulator).
    w1b = w1.astype(jnp.bfloat16)
    w2b = w2.astype(jnp.bfloat16)
    b1f = b1.astype(jnp.float32).reshape(1, H)
    b2f = b2.astype(jnp.float32).reshape(1, D)

    out2d = pl.pallas_call(
        functools.partial(_fused_mlp_kernel, approx_gelu=approx_gelu),
        out_shape=jax.ShapeDtypeStruct((B, D), x.dtype),
        grid=grid,
        in_specs=[
            pl.BlockSpec((tm, D), lambda i: (i, 0)),   # x tile (pipelined)
            pl.BlockSpec((D, H), lambda i: (0, 0)),    # W1 resident
            pl.BlockSpec((1, H), lambda i: (0, 0)),    # b1 resident
            pl.BlockSpec((H, D), lambda i: (0, 0)),    # W2 resident
            pl.BlockSpec((1, D), lambda i: (0, 0)),    # b2 resident
        ],
        out_specs=pl.BlockSpec((tm, D), lambda i: (i, 0)),
        compiler_params=pltpu.CompilerParams(
            dimension_semantics=("parallel",),
            vmem_limit_bytes=32 << 20,   # TM=1024 working set ~13 MiB
        ),
    )(x2d, w1b, b1f, w2b, b2f)

    return out2d.reshape(B, F, P, 2)


def init_params(key, in_features, hidden_features):
    """Deterministic init mirroring nn.Linear (uniform +-1/sqrt(fan_in)).

    Weights are stored as (in, out) so the kernel does plain row-major
    matmuls (PyTorch Linear weight (out, in) is transposed once at init).
    """
    out_features = in_features
    k1, k2, k3, k4 = jax.random.split(key, 4)
    lim1 = 1.0 / (in_features ** 0.5)
    lim2 = 1.0 / (hidden_features ** 0.5)
    w1 = jax.random.uniform(k1, (in_features, hidden_features),
                            jnp.float32, -lim1, lim1)
    b1 = jax.random.uniform(k2, (1, hidden_features), jnp.float32, -lim1, lim1)
    w2 = jax.random.uniform(k3, (hidden_features, out_features),
                            jnp.float32, -lim2, lim2)
    b2 = jax.random.uniform(k4, (1, out_features), jnp.float32, -lim2, lim2)
    return w1, b1, w2, b2


def _ref_forward(x, w1, b1, w2, b2, *, weights_dtype, approx_gelu):
    """Pure-JAX reference; weights_dtype=f32 + approx_gelu=False reproduces
    the exact torch-module semantics."""
    B = x.shape[0]
    x2d = x.reshape(B, -1)
    h = jnp.dot(x2d.astype(weights_dtype), w1.astype(weights_dtype),
                preferred_element_type=jnp.float32) + b1
    h = jax.nn.gelu(h, approximate=approx_gelu)
    o = jnp.dot(h.astype(weights_dtype), w2.astype(weights_dtype),
                preferred_element_type=jnp.float32) + b2
    return o.reshape(x.shape[0], x.shape[1], x.shape[2], 2)


if __name__ == "__main__":
    # opt.in_channels = 2 (implied by .view(B, F, P, 2)),
    # opt.frames = 8, opt.n_joints = 16  -> in_features = 2*16*8 = 256
    F, P, C = 8, 16, 2
    in_features = C * P * F
    hidden_features = 1024

    key = jax.random.PRNGKey(0)
    kx, kp = jax.random.split(key)
    w1, b1, w2, b2 = init_params(kp, in_features, hidden_features)

    # B=2: tiny full-extent block.  B=20: exercises the pad-free partial
    # edge block (tm=8, grid=3, last block half-valid).
    for B in (2, 20):
        x = jax.random.normal(jax.random.fold_in(kx, B), (B, F, P, C),
                              jnp.float32)
        y = pretrain_forward(x, w1, b1, w2, b2)
        jax.block_until_ready(y)
        assert y.shape == (B, F, P, 2)

        # Tight check vs a reference using the kernel's exact precision
        # choices (bf16 weights, f32 accumulation, tanh GELU).
        ref_bf16 = _ref_forward(x, w1, b1, w2, b2,
                                weights_dtype=jnp.bfloat16, approx_gelu=True)
        assert jnp.allclose(y, ref_bf16, atol=2e-3, rtol=2e-3), (
            float(jnp.max(jnp.abs(y - ref_bf16))))

        # Loose check vs the true f32 / erf-GELU torch-module semantics,
        # bounding the bf16+tanh deviation.
        ref_f32 = _ref_forward(x, w1, b1, w2, b2,
                               weights_dtype=jnp.float32, approx_gelu=False)
        assert jnp.allclose(y, ref_f32, atol=3e-2, rtol=3e-2), (
            float(jnp.max(jnp.abs(y - ref_f32))))

    print("KERNEL_OK")
</pallas_src>

<mosaic_0001>
module attributes {stable_mosaic.version = 11 : i64} {
  func.func @_fused_mlp_kernel(%arg0: i32, %arg1: memref<2x256xf32, #tpu.memory_space<vmem>>, %arg2: memref<256x1024xbf16, #tpu.memory_space<vmem>>, %arg3: memref<1x1024xf32, #tpu.memory_space<vmem>>, %arg4: memref<1024x256xbf16, #tpu.memory_space<vmem>>, %arg5: memref<1x256xf32, #tpu.memory_space<vmem>>, %arg6: memref<2x256xf32, #tpu.memory_space<vmem>>) attributes {dimension_semantics = [#tpu.dimension_semantics<parallel>], iteration_bounds = array<i64: 1>, scalar_prefetch = 0 : i64, scratch_operands = 0 : i64, tpu.core_type = #tpu.core_type<tc>, window_params = [{transform_indices = @transform_0, window_bounds = array<i64: 2, 256>}, {pipeline_mode = #tpu.pipeline_mode<synchronous>, transform_indices = @transform_1, window_bounds = array<i64: 256, 1024>}, {pipeline_mode = #tpu.pipeline_mode<synchronous>, transform_indices = @transform_2, window_bounds = array<i64: 1, 1024>}, {pipeline_mode = #tpu.pipeline_mode<synchronous>, transform_indices = @transform_3, window_bounds = array<i64: 1024, 256>}, {pipeline_mode = #tpu.pipeline_mode<synchronous>, transform_indices = @transform_4, window_bounds = array<i64: 1, 256>}, {transform_indices = @transform_5, window_bounds = array<i64: 2, 256>}]} {
    %c0 = arith.constant 0 : index
    %c0_0 = arith.constant 0 : index
    %0 = vector.load %arg1[%c0, %c0_0] : memref<2x256xf32, #tpu.memory_space<vmem>>, vector<2x256xf32>
    %1 = arith.truncf %0 : vector<2x256xf32> to vector<2x256xbf16>
    %c0_1 = arith.constant 0 : index
    %c0_2 = arith.constant 0 : index
    %2 = vector.load %arg2[%c0_1, %c0_2] : memref<256x1024xbf16, #tpu.memory_space<vmem>>, vector<256x1024xbf16>
    %cst = arith.constant dense<0.000000e+00> : vector<2x1024xf32>
    %3 = tpu.matmul %1, %2, %cst {dimension_numbers = #tpu.dot_dimension_numbers<[1], [0], [0], [1], [0, 0, 1, 1], [], []>} : vector<2x256xbf16>, vector<256x1024xbf16>, vector<2x1024xf32> -> vector<2x1024xf32>
    %c0_3 = arith.constant 0 : index
    %c0_4 = arith.constant 0 : index
    %4 = vector.load %arg3[%c0_3, %c0_4] : memref<1x1024xf32, #tpu.memory_space<vmem>>, vector<1x1024xf32>
    %5 = vector.broadcast %4 : vector<1x1024xf32> to vector<2x1024xf32>
    %6 = arith.addf %3, %5 : vector<2x1024xf32>
    %7 = arith.mulf %6, %6 : vector<2x1024xf32>
    %8 = arith.mulf %6, %7 : vector<2x1024xf32>
    %cst_5 = arith.constant 4.471500e-02 : f32
    %9 = vector.broadcast %cst_5 : f32 to vector<2x1024xf32>
    %10 = arith.mulf %9, %8 : vector<2x1024xf32>
    %11 = arith.addf %6, %10 : vector<2x1024xf32>
    %cst_6 = arith.constant 0.797884583 : f32
    %12 = vector.broadcast %cst_6 : f32 to vector<2x1024xf32>
    %13 = arith.mulf %12, %11 : vector<2x1024xf32>
    %14 = math.tanh %13 : vector<2x1024xf32>
    %cst_7 = arith.constant 1.000000e+00 : f32
    %15 = vector.broadcast %cst_7 : f32 to vector<2x1024xf32>
    %16 = arith.addf %15, %14 : vector<2x1024xf32>
    %cst_8 = arith.constant 5.000000e-01 : f32
    %17 = vector.broadcast %cst_8 : f32 to vector<2x1024xf32>
    %18 = arith.mulf %17, %16 : vector<2x1024xf32>
    %19 = arith.mulf %6, %18 : vector<2x1024xf32>
    %20 = arith.truncf %19 : vector<2x1024xf32> to vector<2x1024xbf16>
    %c0_9 = arith.constant 0 : index
    %c0_10 = arith.constant 0 : index
    %21 = vector.load %arg4[%c0_9, %c0_10] : memref<1024x256xbf16, #tpu.memory_space<vmem>>, vector<1024x256xbf16>
    %cst_11 = arith.constant dense<0.000000e+00> : vector<2x256xf32>
    %22 = tpu.matmul %20, %21, %cst_11 {dimension_numbers = #tpu.dot_dimension_numbers<[1], [0], [0], [1], [0, 0, 1, 1], [], []>} : vector<2x1024xbf16>, vector<1024x256xbf16>, vector<2x256xf32> -> vector<2x256xf32>
    %c0_12 = arith.constant 0 : index
    %c0_13 = arith.constant 0 : index
    %23 = vector.load %arg5[%c0_12, %c0_13] : memref<1x256xf32, #tpu.memory_space<vmem>>, vector<1x256xf32>
    %24 = vector.broadcast %23 : vector<1x256xf32> to vector<2x256xf32>
    %25 = arith.addf %22, %24 : vector<2x256xf32>
    %c0_14 = arith.constant 0 : index
    %c0_15 = arith.constant 0 : index
    %26 = vector.load %arg6[%c0_14, %c0_15] : memref<2x256xf32, #tpu.memory_space<vmem>>, vector<2x256xf32>
    tpu.vector_store %arg6[%c0_14, %c0_15], %25 {strides = array<i32>} : memref<2x256xf32, #tpu.memory_space<vmem>>, vector<2x256xf32>,
    return
  }
  func.func @transform_0(%arg0: i32) -> (i32, i32) {
    %c0_i32 = arith.constant 0 : i32
    %c0_i32_0 = arith.constant 0 : i32
    return %arg0, %c0_i32 : i32, i32
  }
  func.func @transform_1(%arg0: i32) -> (i32, i32) {
    %c0_i32 = arith.constant 0 : i32
    %c0_i32_0 = arith.constant 0 : i32
    %c0_i32_1 = arith.constant 0 : i32
    return %c0_i32, %c0_i32_0 : i32, i32
  }
  func.func @transform_2(%arg0: i32) -> (i32, i32) {
    %c0_i32 = arith.constant 0 : i32
    %c0_i32_0 = arith.constant 0 : i32
    %c0_i32_1 = arith.constant 0 : i32
    return %c0_i32, %c0_i32_0 : i32, i32
  }
  func.func @transform_3(%arg0: i32) -> (i32, i32) {
    %c0_i32 = arith.constant 0 : i32
    %c0_i32_0 = arith.constant 0 : i32
    %c0_i32_1 = arith.constant 0 : i32
    return %c0_i32, %c0_i32_0 : i32, i32
  }
  func.func @transform_4(%arg0: i32) -> (i32, i32) {
    %c0_i32 = arith.constant 0 : i32
    %c0_i32_0 = arith.constant 0 : i32
    %c0_i32_1 = arith.constant 0 : i32
    return %c0_i32, %c0_i32_0 : i32, i32
  }
  func.func @transform_5(%arg0: i32) -> (i32, i32) {
    %c0_i32 = arith.constant 0 : i32
    %c0_i32_0 = arith.constant 0 : i32
    return %arg0, %c0_i32 : i32, i32
  }
}

</mosaic_0001>

<bundles_post_ra>
// kernel: pretrain_forward.1
= control target key start
LH: loop header
LB: loop body
LE: loop exit
PB: predicated region body
PF: predicated region fallthrough
CT: control target
= control target key end

     0   :  { %vm2088_vm0 = vcmask 1041408   ;;  %s5084_s1 = inlined_call_operand.vmem [shape: bf16[256,1024], index: 1, kind: input, shape index: {}]   ;;  %s5085_s0 = inlined_call_operand.vmem [shape: f32[2,256], index: 0, kind: input, shape index: {}]   ;;  %s5086_s3 = inlined_call_operand.vmem [shape: bf16[1024,256], index: 3, kind: input, shape index: {}]   ;;  %s5087_s2 = inlined_call_operand.vmem [shape: f32[1,1024], index: 2, kind: input, shape index: {}]   ;;  %s5088_s4 = inlined_call_operand.vmem [shape: f32[1,256], index: 4, kind: input, shape index: {}]   ;;  %s5089_s5 = inlined_call_operand.vmem [shape: f32[2,256], index: 5, kind: output, shape index: {}]  }
   0x1   :  { %v2322_v0 = vld [vmem:[%s5084_s1 + $0x1c0] sm:$0xf]  ;;  %v3176_v5 = vld [vmem:[%s5084_s1 + $0x1c4] sm:$0xf] }
   0x2   :  { %v3180_v1 = vld [vmem:[%s5084_s1 + $0x1dc] sm:$0xf0]  ;;  %v2324_v6 = vld [vmem:[%s5084_s1 + $0x1e0] sm:$0xf0] }
   0x3   :  { %v2578_v2 = vld [vmem:[%s5084_s1 + $0x3c0] sm:$0xf]  ;;  %v2323_v3 = vor.u32 %v3180_v1, %v2322_v0  ;;  %v2327_v8 = vor.u32 %v3176_v5, %v2324_v6  ;;  %v3240_v9 = vld [vmem:[%s5084_s1 + $0x3c4] sm:$0xf] }
   0x4   :  { %v3244_v4 = vld [vmem:[%s5084_s1 + $0x3dc] sm:$0xf0]  ;;  %v2580_v10 = vld [vmem:[%s5084_s1 + $0x3e0] sm:$0xf0] }
   0x5   :  { %v2579_v7 = vor.u32 %v3244_v4, %v2578_v2  ;;  %v2290_v11 = vld [vmem:[%s5084_s1 + $0x180] sm:$0xf]  ;;  %815 = vmatpush.bf16.msra.mxu0 %v2323_v3  ;;  %v2583_v12 = vor.u32 %v3240_v9, %v2580_v10  ;;  %841 = vmatpush.bf16.msra.mxu2 %v2327_v8  ;;  %v3168_v18 = vld [vmem:[%s5084_s1 + $0x184] sm:$0xf] }
   0x6   :  { %v3172_v13 = vld [vmem:[%s5084_s1 + $0x19c] sm:$0xf0]  ;;  %v2292_v19 = vld [vmem:[%s5084_s1 + $0x1a0] sm:$0xf0] }
   0x7   :  { %v2546_v14 = vld [vmem:[%s5084_s1 + $0x380] sm:$0xf]  ;;  %828 = vmatpush.bf16.msra.mxu1 %v2579_v7  ;;  %v2291_v16 = vor.u32 %v3172_v13, %v2290_v11  ;;  %v3232_v20 = vld [vmem:[%s5084_s1 + $0x384] sm:$0xf]  ;;  %854 = vmatpush.bf16.msra.mxu3 %v2583_v12  ;;  %v2295_v21 = vor.u32 %v3168_v18, %v2292_v19 }
   0x8   :  { %v3236_v15 = vld [vmem:[%s5084_s1 + $0x39c] sm:$0xf0]  ;;  %v2548_v22 = vld [vmem:[%s5084_s1 + $0x3a0] sm:$0xf0] }
   0x9   :  { %v2547_v17 = vor.u32 %v3236_v15, %v2546_v14  ;;  %v2258_v23 = vld [vmem:[%s5084_s1 + $0x140] sm:$0xf]  ;;  %v2551_v25 = vor.u32 %v3232_v20, %v2548_v22  ;;  %v3160_v28 = vld [vmem:[%s5084_s1 + $0x144] sm:$0xf]  ;;  %816 = vmatpush.bf16.msra.mxu0 %v2291_v16  ;;  %842 = vmatpush.bf16.msra.mxu2 %v2295_v21 }
   0xa   :  { %v3164_v24 = vld [vmem:[%s5084_s1 + $0x15c] sm:$0xf0]  ;;  %v2260_v30 = vld [vmem:[%s5084_s1 + $0x160] sm:$0xf0] }
   0xb   :  { %v2514_v26 = vld [vmem:[%s5084_s1 + $0x340] sm:$0xf]  ;;  %v2259_v29 = vor.u32 %v3164_v24, %v2258_v23  ;;  %v3224_v31 = vld [vmem:[%s5084_s1 + $0x344] sm:$0xf]  ;;  %829 = vmatpush.bf16.msra.mxu1 %v2547_v17  ;;  %v2263_v34 = vor.u32 %v3160_v28, %v2260_v30  ;;  %855 = vmatpush.bf16.msra.mxu3 %v2551_v25  ;;  %v3181_v30 = vld [vmem:[%s5084_s1 + $0x1e4] sm:$0xf0] }
   0xc   :  { %v3228_v27 = vld [vmem:[%s5084_s1 + $0x35c] sm:$0xf0]  ;;  %v2516_v32 = vld [vmem:[%s5084_s1 + $0x360] sm:$0xf0] }
   0xd   :  { %v2515_v33 = vor.u32 %v3228_v27, %v2514_v26  ;;  %v2226_v35 = vld [vmem:[%s5084_s1 + $0x100] sm:$0xf]  ;;  %v2519_v38 = vor.u32 %v3224_v31, %v2516_v32  ;;  %v3152_v40 = vld [vmem:[%s5084_s1 + $0x104] sm:$0xf]  ;;  %817 = vmatpush.bf16.msra.mxu0 %v2259_v29  ;;  %843 = vmatpush.bf16.msra.mxu2 %v2263_v34  ;;  %v2330_v29 = vld [vmem:[%s5084_s1 + $0x1c8] sm:$0xf] }
   0xe   :  { %v3156_v36 = vld [vmem:[%s5084_s1 + $0x11c] sm:$0xf0]  ;;  %v2228_v41 = vld [vmem:[%s5084_s1 + $0x120] sm:$0xf0]  ;;  %v2586_v31 = vld [vmem:[%s5084_s1 + $0x3c8] sm:$0xf] }
   0xf   :  { %v2482_v37 = vld [vmem:[%s5084_s1 + $0x300] sm:$0xf]  ;;  %v3216_v42 = vld [vmem:[%s5084_s1 + $0x304] sm:$0xf]  ;;  %v2227_v44 = vor.u32 %v3156_v36, %v2226_v35  ;;  %830 = vmatpush.bf16.msra.mxu1 %v2515_v33  ;;  %v2231_v46 = vor.u32 %v3152_v40, %v2228_v41  ;;  %856 = vmatpush.bf16.msra.mxu3 %v2519_v38  ;;  %v3245_v33 = vld [vmem:[%s5084_s1 + $0x3e4] sm:$0xf0]  ;;  %v2331_v41 = vor.u32 %v3181_v30, %v2330_v29 }
  0x10   :  { %v3220_v39 = vld [vmem:[%s5084_s1 + $0x31c] sm:$0xf0]  ;;  %v2484_v43 = vld [vmem:[%s5084_s1 + $0x320] sm:$0xf0]  ;;  %v3177_v34 = vld [vmem:[%s5084_s1 + $0x1cc] sm:$0xf] }
  0x11   :  { %v2483_v45 = vor.u32 %v3220_v39, %v2482_v37  ;;  %v2194_v47 = vld [vmem:[%s5084_s1 + $0xc0] sm:$0xf]  ;;  %v2487_v50 = vor.u32 %v3216_v42, %v2484_v43  ;;  %v3144_v52 = vld [vmem:[%s5084_s1 + $0xc4] sm:$0xf]  ;;  %818 = vmatpush.bf16.msra.mxu0 %v2227_v44  ;;  %844 = vmatpush.bf16.msra.mxu2 %v2231_v46  ;;  %v2332_v35 = vld [vmem:[%s5084_s1 + $0x1e8] sm:$0xf0]  ;;  %v2587_v44 = vor.u32 %v3245_v33, %v2586_v31 }
  0x12   :  { %v3148_v48 = vld [vmem:[%s5084_s1 + $0xdc] sm:$0xf0]  ;;  %v2196_v53 = vld [vmem:[%s5084_s1 + $0xe0] sm:$0xf0]  ;;  %v3241_v38 = vld [vmem:[%s5084_s1 + $0x3cc] sm:$0xf] }
  0x13   :  { %v2450_v49 = vld [vmem:[%s5084_s1 + $0x2c0] sm:$0xf]  ;;  %v3208_v54 = vld [vmem:[%s5084_s1 + $0x2c4] sm:$0xf]  ;;  %v2195_v56 = vor.u32 %v3148_v48, %v2194_v47  ;;  %831 = vmatpush.bf16.msra.mxu1 %v2483_v45  ;;  %v2199_v58 = vor.u32 %v3144_v52, %v2196_v53  ;;  %857 = vmatpush.bf16.msra.mxu3 %v2487_v50  ;;  %v2588_v39 = vld [vmem:[%s5084_s1 + $0x3e8] sm:$0xf0]  ;;  %v2335_v45 = vor.u32 %v3177_v34, %v2332_v35 }
  0x14   :  { %v3212_v51 = vld [vmem:[%s5084_s1 + $0x2dc] sm:$0xf0]  ;;  %v2452_v55 = vld [vmem:[%s5084_s1 + $0x2e0] sm:$0xf0]  ;;  %v2298_v42 = vld [vmem:[%s5084_s1 + $0x188] sm:$0xf] }
  0x15   :  { %v2451_v57 = vor.u32 %v3212_v51, %v2450_v49  ;;  %v2162_v59 = vld [vmem:[%s5084_s1 + $0x80] sm:$0xf]  ;;  %v2455_v62 = vor.u32 %v3208_v54, %v2452_v55  ;;  %v3136_v0 = vld [vmem:[%s5084_s1 + $0x84] sm:$0xf]  ;;  %819 = vmatpush.bf16.msra.mxu0 %v2195_v56  ;;  %845 = vmatpush.bf16.msra.mxu2 %v2199_v58  ;;  %v3173_v43 = vld [vmem:[%s5084_s1 + $0x1a4] sm:$0xf0]  ;;  %v2591_v49 = vor.u32 %v3241_v38, %v2588_v39 }
  0x16   :  { %v3140_v60 = vld [vmem:[%s5084_s1 + $0x9c] sm:$0xf0]  ;;  %v2164_v1 = vld [vmem:[%s5084_s1 + $0xa0] sm:$0xf0]  ;;  %v2554_v46 = vld [vmem:[%s5084_s1 + $0x388] sm:$0xf] }
  0x17   :  { %v2418_v61 = vld [vmem:[%s5084_s1 + $0x280] sm:$0xf]  ;;  %v3200_v2 = vld [vmem:[%s5084_s1 + $0x284] sm:$0xf]  ;;  %v2163_v4 = vor.u32 %v3140_v60, %v2162_v59  ;;  %832 = vmatpush.bf16.msra.mxu1 %v2451_v57  ;;  %v2167_v6 = vor.u32 %v3136_v0, %v2164_v1  ;;  %858 = vmatpush.bf16.msra.mxu3 %v2455_v62  ;;  %v3237_v47 = vld [vmem:[%s5084_s1 + $0x3a4] sm:$0xf0]  ;;  %v2299_v57 = vor.u32 %v3173_v43, %v2298_v42 }
  0x18   :  { %v3204_v63 = vld [vmem:[%s5084_s1 + $0x29c] sm:$0xf0]  ;;  %v2420_v3 = vld [vmem:[%s5084_s1 + $0x2a0] sm:$0xf0]  ;;  %v3169_v48 = vld [vmem:[%s5084_s1 + $0x18c] sm:$0xf]  ;;  %v2555_v58 = vor.u32 %v3237_v47, %v2554_v46 }
  0x19   :  { %v2419_v5 = vor.u32 %v3204_v63, %v2418_v61  ;;  %v2130_v7 = vld [vmem:[%s5084_s1 + $0x40] sm:$0xf]  ;;  %v2423_v10 = vor.u32 %v3200_v2, %v2420_v3  ;;  %v3128_v12 = vld [vmem:[%s5084_s1 + $0x44] sm:$0xf]  ;;  %820 = vmatpush.bf16.msra.mxu0 %v2163_v4  ;;  %846 = vmatpush.bf16.msra.mxu2 %v2167_v6  ;;  %v2300_v50 = vld [vmem:[%s5084_s1 + $0x1a8] sm:$0xf0] }
  0x1a   :  { %v3132_v8 = vld [vmem:[%s5084_s1 + $0x5c] sm:$0xf0]  ;;  %v2132_v13 = vld [vmem:[%s5084_s1 + $0x60] sm:$0xf0]  ;;  %v3233_v51 = vld [vmem:[%s5084_s1 + $0x38c] sm:$0xf]  ;;  %v2303_v59 = vor.u32 %v3169_v48, %v2300_v50 }
  0x1b   :  { %v2386_v9 = vld [vmem:[%s5084_s1 + $0x240] sm:$0xf]  ;;  %v3192_v14 = vld [vmem:[%s5084_s1 + $0x244] sm:$0xf]  ;;  %v2131_v17 = vor.u32 %v3132_v8, %v2130_v7  ;;  %833 = vmatpush.bf16.msra.mxu1 %v2419_v5  ;;  %v2135_v22 = vor.u32 %v3128_v12, %v2132_v13  ;;  %859 = vmatpush.bf16.msra.mxu3 %v2423_v10  ;;  %v2556_v52 = vld [vmem:[%s5084_s1 + $0x3a8] sm:$0xf0] }
  0x1c   :  { %v3196_v11 = vld [vmem:[%s5084_s1 + $0x25c] sm:$0xf0]  ;;  %v2388_v15 = vld [vmem:[%s5084_s1 + $0x260] sm:$0xf0]  ;;  %v2266_v60 = vld [vmem:[%s5084_s1 + $0x148] sm:$0xf]  ;;  %v2559_v63 = vor.u32 %v3233_v51, %v2556_v52 }
  0x1d   :  { %v2098_v16 = vld [vmem:[%s5084_s1] sm:$0xf]  ;;  %v2387_v21 = vor.u32 %v3196_v11, %v2386_v9  ;;  %v3120_v23 = vld [vmem:[%s5084_s1 + $0x4] sm:$0xf]  ;;  %v2391_v26 = vor.u32 %v3192_v14, %v2388_v15  ;;  %821 = vmatpush.bf16.msra.mxu0 %v2131_v17  ;;  %847 = vmatpush.bf16.msra.mxu2 %v2135_v22  ;;  %v3165_v61 = vld [vmem:[%s5084_s1 + $0x164] sm:$0xf0] }
  0x1e   :  { %v3124_v18 = vld [vmem:[%s5084_s1 + $0x1c] sm:$0xf0]  ;;  %v2100_v24 = vld [vmem:[%s5084_s1 + $0x20] sm:$0xf0]  ;;  %v2522_v62 = vld [vmem:[%s5084_s1 + $0x348] sm:$0xf]  ;;  %v2267_v5 = vor.u32 %v3165_v61, %v2266_v60 }
  0x1f   :  { %v2354_v19 = vld [vmem:[%s5084_s1 + $0x200] sm:$0xf]  ;;  %v3184_v27 = vld [vmem:[%s5084_s1 + $0x204] sm:$0xf]  ;;  %v2099_v32 = vor.u32 %v3124_v18, %v2098_v16  ;;  %834 = vmatpush.bf16.msra.mxu1 %v2387_v21  ;;  %v2103_v37 = vor.u32 %v3120_v23, %v2100_v24  ;;  %860 = vmatpush.bf16.msra.mxu3 %v2391_v26  ;;  %v3229_v0 = vld [vmem:[%s5084_s1 + $0x364] sm:$0xf0] }
  0x20   :  { %v3188_v20 = vld [vmem:[%s5084_s1 + $0x21c] sm:$0xf0]  ;;  %v2356_v28 = vld [vmem:[%s5084_s1 + $0x220] sm:$0xf0]  ;;  %v3161_v1 = vld [vmem:[%s5084_s1 + $0x14c] sm:$0xf]  ;;  %v2523_v6 = vor.u32 %v3229_v0, %v2522_v62 }
  0x21   :  { %v20_v25 = vld [vmem:[%s5085_s0] sm:$0xf]  ;;  %v2355_v36 = vor.u32 %v3188_v20, %v2354_v19  ;;  %v2359_v40 = vor.u32 %v3184_v27, %v2356_v28  ;;  %822 = vmatpush.bf16.msra.mxu0 %v2099_v32  ;;  %848 = vmatpush.bf16.msra.mxu2 %v2103_v37  ;;  %v2268_v2 = vld [vmem:[%s5084_s1 + $0x168] sm:$0xf0]  ;;  %v2234_v8 = vld [vmem:[%s5084_s1 + $0x108] sm:$0xf] }
  0x22   :  { %22 = vst [vmem:[#allocation1] ss:$4 sm:$0xff] %v20_v25  ;;  %v3225_v3 = vld [vmem:[%s5084_s1 + $0x34c] sm:$0xf]  ;;  %v2271_v7 = vor.u32 %v3161_v1, %v2268_v2  ;;  %v3157_v9 = vld [vmem:[%s5084_s1 + $0x124] sm:$0xf0] }
  0x23   :  { %835 = vmatpush.bf16.msra.mxu1 %v2355_v36  ;;  %861 = vmatpush.bf16.msra.mxu3 %v2359_v40  ;;  %v2524_v4 = vld [vmem:[%s5084_s1 + $0x368] sm:$0xf0]  ;;  %v2490_v10 = vld [vmem:[%s5084_s1 + $0x308] sm:$0xf]  ;;  %v2235_v17 = vor.u32 %v3157_v9, %v2234_v8  ;;  %v3178_v8 = vld [vmem:[%s5084_s1 + $0x1d4] sm:$0xf] }
  0x24   :  { %v2527_v11 = vor.u32 %v3225_v3, %v2524_v4  ;;  %v3221_v12 = vld [vmem:[%s5084_s1 + $0x324] sm:$0xf0]  ;;  %v3153_v13 = vld [vmem:[%s5084_s1 + $0x10c] sm:$0xf]  ;;  %v2338_v3 = vld [vmem:[%s5084_s1 + $0x1d0] sm:$0xf] }
  0x25   :  { %867 = vmatpush.bf16.msrb.mxu0 %v2331_v41  ;;  %893 = vmatpush.bf16.msrb.mxu2 %v2335_v45  ;;  %v2236_v14 = vld [vmem:[%s5084_s1 + $0x128] sm:$0xf0]  ;;  %v2491_v18 = vor.u32 %v3221_v12, %v2490_v10  ;;  %v2202_v20 = vld [vmem:[%s5084_s1 + $0xc8] sm:$0xf]  ;;  %v3182_v4 = vld [vmem:[%s5084_s1 + $0x1ec] sm:$0xf0] }
  0x26   :  { %v3217_v15 = vld [vmem:[%s5084_s1 + $0x30c] sm:$0xf]  ;;  %v2239_v19 = vor.u32 %v3153_v13, %v2236_v14  ;;  %v3149_v21 = vld [vmem:[%s5084_s1 + $0xe4] sm:$0xf0]  ;;  %v2340_v9 = vld [vmem:[%s5084_s1 + $0x1f0] sm:$0xf0] }
  0x27   :  { %880 = vmatpush.bf16.msrb.mxu1 %v2587_v44  ;;  %906 = vmatpush.bf16.msrb.mxu3 %v2591_v49  ;;  %v2492_v16 = vld [vmem:[%s5084_s1 + $0x328] sm:$0xf0]  ;;  %v2458_v22 = vld [vmem:[%s5084_s1 + $0x2c8] sm:$0xf]  ;;  %v2203_v29 = vor.u32 %v3149_v21, %v2202_v20  ;;  %v3242_v12 = vld [vmem:[%s5084_s1 + $0x3d4] sm:$0xf] }
  0x28   :  { %v2495_v23 = vor.u32 %v3217_v15, %v2492_v16  ;;  %v3213_v24 = vld [vmem:[%s5084_s1 + $0x2e4] sm:$0xf0]  ;;  %v3145_v25 = vld [vmem:[%s5084_s1 + $0xcc] sm:$0xf]  ;;  %v2596_v13 = vld [vmem:[%s5084_s1 + $0x3f0] sm:$0xf0]  ;;  %v2339_v15 = vor.u32 %v3182_v4, %v2338_v3 }
  0x29   :  { %v23_v53 = vld.sshfl [vmem:[#allocation1] sm:$0xff pattern:$0x73625140]  ;;  %v24_v54 = vld.sshfl [vmem:[#allocation1 + $0x8] sm:$0xff pattern:$0x73625140]  ;;  %868 = vmatpush.bf16.msrb.mxu0 %v2299_v57  ;;  %894 = vmatpush.bf16.msrb.mxu2 %v2303_v59  ;;  %v2459_v30 = vor.u32 %v3213_v24, %v2458_v22  ;;  %v2599_v21 = vor.u32 %v3242_v12, %v2596_v13 }
  0x2a   :  { %v3665_v55 = vpack.c.bf16 %v23_v53, %v23_v53  ;;  %v3667_v56 = vpack.c.bf16 %v24_v54, %v24_v54  ;;  %v2204_v26 = vld [vmem:[%s5084_s1 + $0xe8] sm:$0xf0]  ;;  %v2170_v32 = vld [vmem:[%s5084_s1 + $0x88] sm:$0xf]  ;;  %v2562_v20 = vld [vmem:[%s5084_s1 + $0x390] sm:$0xf] }
  0x2b   :  { %881 = vmatpush.bf16.msrb.mxu1 %v2555_v58  ;;  %907 = vmatpush.bf16.msrb.mxu3 %v2559_v63  ;;  %v3209_v27 = vld [vmem:[%s5084_s1 + $0x2cc] sm:$0xf]  ;;  %v2207_v31 = vor.u32 %v3145_v25, %v2204_v26  ;;  %v3141_v33 = vld [vmem:[%s5084_s1 + $0xa4] sm:$0xf0]  ;;  %v3238_v22 = vld [vmem:[%s5084_s1 + $0x3ac] sm:$0xf0] }
  0x2c   :  { %849 = vmatmul.bf16.vlgmr.msra.gmra.mxu2 %v3665_v55  ;;  %862 = vmatmul.bf16.vlgmr.msra.gmra.mxu3 %v3667_v56  ;;  %v2460_v28 = vld [vmem:[%s5084_s1 + $0x2e8] sm:$0xf0]  ;;  %v2426_v34 = vld [vmem:[%s5084_s1 + $0x288] sm:$0xf]  ;;  %v2171_v41 = vor.u32 %v3141_v33, %v2170_v32  ;;  %v2308_v24 = vld [vmem:[%s5084_s1 + $0x1b0] sm:$0xf0] }
  0x2d   :  { %823 = vmatmul.bf16.vlgmr.msra.gmra.mxu0 %v3665_v55  ;;  %836 = vmatmul.bf16.vlgmr.msra.gmra.mxu1 %v3667_v56  ;;  %v2463_v35 = vor.u32 %v3209_v27, %v2460_v28  ;;  %v3205_v36 = vld [vmem:[%s5084_s1 + $0x2a4] sm:$0xf0]  ;;  %v3137_v37 = vld [vmem:[%s5084_s1 + $0x8c] sm:$0xf]  ;;  %v3234_v25 = vld [vmem:[%s5084_s1 + $0x394] sm:$0xf]  ;;  %v2563_v28 = vor.u32 %v3238_v22, %v2562_v20 }
  0x2e   :  { %869 = vmatpush.bf16.msrb.mxu0 %v2267_v5  ;;  %895 = vmatpush.bf16.msrb.mxu2 %v2271_v7  ;;  %v2172_v38 = vld [vmem:[%s5084_s1 + $0xa8] sm:$0xf0]  ;;  %v2427_v42 = vor.u32 %v3205_v36, %v2426_v34  ;;  %v2138_v44 = vld [vmem:[%s5084_s1 + $0x48] sm:$0xf]  ;;  %v2594_v5 = vld [vmem:[%s5084_s1 + $0x3d0] sm:$0xf] }
  0x2f   :  { %882 = vmatpush.bf16.msrb.mxu1 %v2523_v6  ;;  %908 = vmatpush.bf16.msrb.mxu3 %v2527_v11  ;;  %v3201_v39 = vld [vmem:[%s5084_s1 + $0x28c] sm:$0xf]  ;;  %v2175_v43 = vor.u32 %v3137_v37, %v2172_v38  ;;  %v3133_v45 = vld [vmem:[%s5084_s1 + $0x64] sm:$0xf0]  ;;  %v3246_v7 = vld [vmem:[%s5084_s1 + $0x3ec] sm:$0xf0] }
  0x30   :  { %v2428_v40 = vld [vmem:[%s5084_s1 + $0x2a8] sm:$0xf0]  ;;  %v2394_v46 = vld [vmem:[%s5084_s1 + $0x248] sm:$0xf]  ;;  %v2139_v53 = vor.u32 %v3133_v45, %v2138_v44  ;;  %v2595_v16 = vor.u32 %v3246_v7, %v2594_v5  ;;  %v2564_v26 = vld [vmem:[%s5084_s1 + $0x3b0] sm:$0xf0] }
  0x31   :  { %v2431_v47 = vor.u32 %v3201_v39, %v2428_v40  ;;  %v3197_v48 = vld [vmem:[%s5084_s1 + $0x264] sm:$0xf0]  ;;  %v3129_v49 = vld [vmem:[%s5084_s1 + $0x4c] sm:$0xf]  ;;  %v2530_v32 = vld [vmem:[%s5084_s1 + $0x350] sm:$0xf]  ;;  %v2567_v33 = vor.u32 %v3234_v25, %v2564_v26 }
  0x32   :  { %870 = vmatpush.bf16.msrb.mxu0 %v2235_v17  ;;  %896 = vmatpush.bf16.msrb.mxu2 %v2239_v19  ;;  %v2140_v50 = vld [vmem:[%s5084_s1 + $0x68] sm:$0xf0]  ;;  %v2106_v54 = vld [vmem:[%s5084_s1 + $0x8] sm:$0xf]  ;;  %v2395_v58 = vor.u32 %v3197_v48, %v2394_v46  ;;  %v2343_v17 = vor.u32 %v3178_v8, %v2340_v9  ;;  %v3174_v19 = vld [vmem:[%s5084_s1 + $0x1ac] sm:$0xf0] }
  0x33   :  { %883 = vmatpush.bf16.msrb.mxu1 %v2491_v18  ;;  %909 = vmatpush.bf16.msrb.mxu3 %v2495_v23  ;;  %v3193_v51 = vld [vmem:[%s5084_s1 + $0x24c] sm:$0xf]  ;;  %v3125_v57 = vld [vmem:[%s5084_s1 + $0x24] sm:$0xf0]  ;;  %v2143_v59 = vor.u32 %v3129_v49, %v2140_v50  ;;  %v2306_v18 = vld [vmem:[%s5084_s1 + $0x190] sm:$0xf] }
  0x34   :  { %v2396_v52 = vld [vmem:[%s5084_s1 + $0x268] sm:$0xf0]  ;;  %v2362_v60 = vld [vmem:[%s5084_s1 + $0x208] sm:$0xf]  ;;  %v2107_v6 = vor.u32 %v3125_v57, %v2106_v54  ;;  %v3170_v23 = vld [vmem:[%s5084_s1 + $0x194] sm:$0xf]  ;;  %v2307_v27 = vor.u32 %v3174_v19, %v2306_v18 }
  0x35   :  { %v3189_v61 = vld [vmem:[%s5084_s1 + $0x224] sm:$0xf0]  ;;  %v3121_v62 = vld [vmem:[%s5084_s1 + $0xc] sm:$0xf]  ;;  %v2399_v63 = vor.u32 %v3193_v51, %v2396_v52  ;;  %v3230_v34 = vld [vmem:[%s5084_s1 + $0x36c] sm:$0xf0] }
  0x36   :  { %871 = vmatpush.bf16.msrb.mxu0 %v2203_v29  ;;  %897 = vmatpush.bf16.msrb.mxu2 %v2207_v31  ;;  %v2108_v0 = vld [vmem:[%s5084_s1 + $0x28] sm:$0xf0]  ;;  %v2363_v10 = vor.u32 %v3189_v61, %v2362_v60  ;;  %v2311_v29 = vor.u32 %v3170_v23, %v2308_v24  ;;  %v3166_v31 = vld [vmem:[%s5084_s1 + $0x16c] sm:$0xf0]  ;;  %v2276_v36 = vld [vmem:[%s5084_s1 + $0x170] sm:$0xf0]  ;;  %v2531_v40 = vor.u32 %v3230_v34, %v2530_v32 }
  0x37   :  { %884 = vmatpush.bf16.msrb.mxu1 %v2459_v30  ;;  %910 = vmatpush.bf16.msrb.mxu3 %v2463_v35  ;;  %v3185_v1 = vld [vmem:[%s5084_s1 + $0x20c] sm:$0xf]  ;;  %v2111_v11 = vor.u32 %v3121_v62, %v2108_v0  ;;  %v2274_v30 = vld [vmem:[%s5084_s1 + $0x150] sm:$0xf]  ;;  %v3162_v35 = vld [vmem:[%s5084_s1 + $0x154] sm:$0xf] }
  0x38   :  { %v2364_v2 = vld [vmem:[%s5084_s1 + $0x228] sm:$0xf0]  ;;  %v3226_v37 = vld [vmem:[%s5084_s1 + $0x354] sm:$0xf]  ;;  %v2275_v39 = vor.u32 %v3166_v31, %v2274_v30  ;;  %v2498_v44 = vld [vmem:[%s5084_s1 + $0x310] sm:$0xf] }
  0x39   :  { %v2367_v14 = vor.u32 %v3185_v1, %v2364_v2  ;;  %v2532_v38 = vld [vmem:[%s5084_s1 + $0x370] sm:$0xf0]  ;;  %v3222_v46 = vld [vmem:[%s5084_s1 + $0x32c] sm:$0xf0] }
  0x3a   :  { %872 = vmatpush.bf16.msrb.mxu0 %v2171_v41  ;;  %898 = vmatpush.bf16.msrb.mxu2 %v2175_v43  ;;  %v2279_v41 = vor.u32 %v3162_v35, %v2276_v36  ;;  %v3158_v43 = vld [vmem:[%s5084_s1 + $0x12c] sm:$0xf0]  ;;  %v2535_v45 = vor.u32 %v3226_v37, %v2532_v38  ;;  %v2244_v48 = vld [vmem:[%s5084_s1 + $0x130] sm:$0xf0]  ;;  %v2499_v52 = vor.u32 %v3222_v46, %v2498_v44  ;;  %v2346_v37 = vld [vmem:[%s5084_s1 + $0x1d8] sm:$0xf] }
  0x3b   :  { %885 = vmatpush.bf16.msrb.mxu1 %v2427_v42  ;;  %911 = vmatpush.bf16.msrb.mxu3 %v2431_v47  ;;  %v2242_v42 = vld [vmem:[%s5084_s1 + $0x110] sm:$0xf]  ;;  %v3154_v47 = vld [vmem:[%s5084_s1 + $0x114] sm:$0xf]  ;;  %v3183_v38 = vld [vmem:[%s5084_s1 + $0x1f4] sm:$0xf0] }
  0x3c   :  { %v3218_v49 = vld [vmem:[%s5084_s1 + $0x314] sm:$0xf]  ;;  %v2243_v51 = vor.u32 %v3158_v43, %v2242_v42  ;;  %v2210_v54 = vld [vmem:[%s5084_s1 + $0xd0] sm:$0xf]  ;;  %v3179_v42 = vld [vmem:[%s5084_s1 + $0x1dc] sm:$0xf] }
  0x3d   :  { %v2500_v50 = vld [vmem:[%s5084_s1 + $0x330] sm:$0xf0]  ;;  %v3150_v57 = vld [vmem:[%s5084_s1 + $0xec] sm:$0xf0]  ;;  %v2348_v43 = vld [vmem:[%s5084_s1 + $0x1f8] sm:$0xf0] }
  0x3e   :  { %873 = vmatpush.bf16.msrb.mxu0 %v2139_v53  ;;  %899 = vmatpush.bf16.msrb.mxu2 %v2143_v59  ;;  %v2247_v53 = vor.u32 %v3154_v47, %v2244_v48  ;;  %v2503_v59 = vor.u32 %v3218_v49, %v2500_v50  ;;  %v3214_v60 = vld [vmem:[%s5084_s1 + $0x2ec] sm:$0xf0]  ;;  %v3146_v61 = vld [vmem:[%s5084_s1 + $0xd4] sm:$0xf]  ;;  %v2211_v1 = vor.u32 %v3150_v57, %v2210_v54  ;;  %v3243_v46 = vld [vmem:[%s5084_s1 + $0x3dc] sm:$0xf] }
  0x3f   :  { %886 = vmatpush.bf16.msrb.mxu1 %v2395_v58  ;;  %912 = vmatpush.bf16.msrb.mxu3 %v2399_v63  ;;  %v2466_v58 = vld [vmem:[%s5084_s1 + $0x2d0] sm:$0xf]  ;;  %v2212_v62 = vld [vmem:[%s5084_s1 + $0xf0] sm:$0xf0]  ;;  %v2604_v47 = vld [vmem:[%s5084_s1 + $0x3f8] sm:$0xf0]  ;;  %v2347_v49 = vor.u32 %v3183_v38, %v2346_v37 }
  0x40   :  { %v3210_v63 = vld [vmem:[%s5084_s1 + $0x2d4] sm:$0xf]  ;;  %v2467_v2 = vor.u32 %v3214_v60, %v2466_v58  ;;  %v2215_v3 = vor.u32 %v3146_v61, %v2212_v62  ;;  %v2178_v4 = vld [vmem:[%s5084_s1 + $0x90] sm:$0xf]  ;;  %v2570_v54 = vld [vmem:[%s5084_s1 + $0x398] sm:$0xf]  ;;  %v2607_v57 = vor.u32 %v3243_v46, %v2604_v47 }
  0x41   :  { %v2468_v0 = vld [vmem:[%s5084_s1 + $0x2f0] sm:$0xf0]  ;;  %v3142_v5 = vld [vmem:[%s5084_s1 + $0xac] sm:$0xf0]  ;;  %v3239_v58 = vld [vmem:[%s5084_s1 + $0x3b4] sm:$0xf0] }
  0x42   :  { %874 = vmatpush.bf16.msrb.mxu0 %v2107_v6  ;;  %900 = vmatpush.bf16.msrb.mxu2 %v2111_v11  ;;  %v2434_v6 = vld [vmem:[%s5084_s1 + $0x290] sm:$0xf]  ;;  %v2471_v7 = vor.u32 %v3210_v63, %v2468_v0  ;;  %v3138_v9 = vld [vmem:[%s5084_s1 + $0x94] sm:$0xf]  ;;  %v2179_v13 = vor.u32 %v3142_v5, %v2178_v4  ;;  %v2316_v60 = vld [vmem:[%s5084_s1 + $0x1b8] sm:$0xf0]  ;;  %v2571_v0 = vor.u32 %v3239_v58, %v2570_v54 }
  0x43   :  { %887 = vmatpush.bf16.msrb.mxu1 %v2363_v10  ;;  %913 = vmatpush.bf16.msrb.mxu3 %v2367_v14  ;;  %v3206_v8 = vld [vmem:[%s5084_s1 + $0x2ac] sm:$0xf0]  ;;  %v2180_v10 = vld [vmem:[%s5084_s1 + $0xb0] sm:$0xf0]  ;;  %v3235_v61 = vld [vmem:[%s5084_s1 + $0x39c] sm:$0xf] }
  0x44   :  { %v3202_v11 = vld [vmem:[%s5084_s1 + $0x294] sm:$0xf]  ;;  %v2435_v14 = vor.u32 %v3206_v8, %v2434_v6  ;;  %v2402_v18 = vld [vmem:[%s5084_s1 + $0x250] sm:$0xf]  ;;  %v2572_v62 = vld [vmem:[%s5084_s1 + $0x3b8] sm:$0xf0] }
  0x45   :  { %875 = vmatmul.bf16.vlgmr.msrb.gmra.mxu0 %v3665_v55  ;;  %901 = vmatmul.bf16.vlgmr.msrb.gmra.mxu2 %v3665_v55  ;;  %v2436_v12 = vld [vmem:[%s5084_s1 + $0x2b0] sm:$0xf0]  ;;  %v3198_v20 = vld [vmem:[%s5084_s1 + $0x26c] sm:$0xf0]  ;;  %v2538_v4 = vld [vmem:[%s5084_s1 + $0x358] sm:$0xf]  ;;  %v2575_v5 = vor.u32 %v3235_v61, %v2572_v62 }
  0x46   :  { %919 = vmatpush.bf16.msra.mxu0 %v2339_v15  ;;  %945 = vmatpush.bf16.msra.mxu2 %v2343_v17  ;;  %v2183_v15 = vor.u32 %v3138_v9, %v2180_v10  ;;  %v3134_v17 = vld [vmem:[%s5084_s1 + $0x6c] sm:$0xf0]  ;;  %v2439_v19 = vor.u32 %v3202_v11, %v2436_v12  ;;  %v2148_v22 = vld [vmem:[%s5084_s1 + $0x70] sm:$0xf0]  ;;  %v3231_v6 = vld [vmem:[%s5084_s1 + $0x374] sm:$0xf0] }
  0x47   :  { %932 = vmatpush.bf16.msra.mxu1 %v2595_v16  ;;  %958 = vmatpush.bf16.msra.mxu3 %v2599_v21  ;;  %v2146_v16 = vld [vmem:[%s5084_s1 + $0x50] sm:$0xf]  ;;  %v3130_v21 = vld [vmem:[%s5084_s1 + $0x54] sm:$0xf]  ;;  %v2284_v8 = vld [vmem:[%s5084_s1 + $0x178] sm:$0xf0]  ;;  %v2539_v12 = vor.u32 %v3231_v6, %v2538_v4 }
  0x48   :  { %888 = vmatmul.bf16.vlgmr.msrb.gmra.mxu1 %v3667_v56  ;;  %914 = vmatmul.bf16.vlgmr.msrb.gmra.mxu3 %v3667_v56  ;;  %v3194_v23 = vld [vmem:[%s5084_s1 + $0x254] sm:$0xf]  ;;  %v2147_v25 = vor.u32 %v3134_v17, %v2146_v16  ;;  %v2114_v26 = vld [vmem:[%s5084_s1 + $0x10] sm:$0xf]  ;;  %v3227_v9 = vld [vmem:[%s5084_s1 + $0x35c] sm:$0xf] }
  0x49   :  { %v2404_v24 = vld [vmem:[%s5084_s1 + $0x270] sm:$0xf0]  ;;  %v2370_v30 = vld [vmem:[%s5084_s1 + $0x210] sm:$0xf]  ;;  %v2540_v10 = vld [vmem:[%s5084_s1 + $0x378] sm:$0xf0] }
  0x4a   :  { %920 = vmatpush.bf16.msra.mxu0 %v2307_v27  ;;  %946 = vmatpush.bf16.msra.mxu2 %v2311_v29  ;;  %v3126_v27 = vld [vmem:[%s5084_s1 + $0x2c] sm:$0xf0]  ;;  %v2151_v29 = vor.u32 %v3130_v21, %v2148_v22  ;;  %v3122_v32 = vld [vmem:[%s5084_s1 + $0x14] sm:$0xf]  ;;  %v2506_v16 = vld [vmem:[%s5084_s1 + $0x318] sm:$0xf]  ;;  %v2543_v17 = vor.u32 %v3227_v9, %v2540_v10 }
  0x4b   :  { %933 = vmatpush.bf16.msra.mxu1 %v2563_v28  ;;  %959 = vmatpush.bf16.msra.mxu3 %v2567_v33  ;;  %v2403_v28 = vor.u32 %v3198_v20, %v2402_v18  ;;  %v3190_v31 = vld [vmem:[%s5084_s1 + $0x22c] sm:$0xf0]  ;;  %v2407_v33 = vor.u32 %v3194_v23, %v2404_v24  ;;  %v2116_v34 = vld [vmem:[%s5084_s1 + $0x30] sm:$0xf0]  ;;  %v3223_v18 = vld [vmem:[%s5084_s1 + $0x334] sm:$0xf0] }
  0x4c   :  { %v3186_v35 = vld [vmem:[%s5084_s1 + $0x214] sm:$0xf]  ;;  %v2371_v44 = vor.u32 %v3190_v31, %v2370_v30  ;;  %v2252_v20 = vld [vmem:[%s5084_s1 + $0x138] sm:$0xf0]  ;;  %v2507_v24 = vor.u32 %v3223_v18, %v2506_v16  ;;  %v3215_v30 = vld [vmem:[%s5084_s1 + $0x2f4] sm:$0xf0] }
  0x4d   :  { %v2372_v36 = vld [vmem:[%s5084_s1 + $0x230] sm:$0xf0]  ;;  %v3219_v21 = vld [vmem:[%s5084_s1 + $0x31c] sm:$0xf]  ;;  %v2186_v38 = vld [vmem:[%s5084_s1 + $0x98] sm:$0xf] }
  0x4e   :  { %921 = vmatpush.bf16.msra.mxu0 %v2275_v39  ;;  %947 = vmatpush.bf16.msra.mxu2 %v2279_v41  ;;  %v2602_v39 = vld [vmem:[%s5084_s1 + $0x3d8] sm:$0xf]  ;;  %v2375_v48 = vor.u32 %v3186_v35, %v2372_v36  ;;  %v2508_v22 = vld [vmem:[%s5084_s1 + $0x338] sm:$0xf0]  ;;  %v2666_v9 = vld [vmem:[%s5086_s3 + $0x70] sm:$0xf] }
  0x4f   :  { %934 = vmatpush.bf16.msra.mxu1 %v2531_v40  ;;  %960 = vmatpush.bf16.msra.mxu3 %v2535_v45  ;;  %v2115_v40 = vor.u32 %v3126_v27, %v2114_v26  ;;  %v3247_v41 = vld [vmem:[%s5084_s1 + $0x3f4] sm:$0xf0]  ;;  %v2119_v45 = vor.u32 %v3122_v32, %v2116_v34  ;;  %v3147_v31 = vld [vmem:[%s5084_s1 + $0xdc] sm:$0xf]  ;;  %v2730_v16 = vld [vmem:[%s5086_s3 + $0xf0] sm:$0xf] }
  0x50   :  { %v2603_v50 = vor.u32 %v3247_v41, %v2602_v39  ;;  %v2218_v26 = vld [vmem:[%s5084_s1 + $0xd8] sm:$0xf]  ;;  %v2220_v32 = vld [vmem:[%s5084_s1 + $0xf8] sm:$0xf0] }
  0x51   :  { %v3151_v27 = vld [vmem:[%s5084_s1 + $0xf4] sm:$0xf0]  ;;  %v2476_v34 = vld [vmem:[%s5084_s1 + $0x2f8] sm:$0xf0]  ;;  %v2223_v37 = vor.u32 %v3147_v31, %v2220_v32  ;;  %v2706_v32 = vld [vmem:[%s5086_s3 + $0xc0] sm:$0xf] }
  0x52   :  { %922 = vmatpush.bf16.msra.mxu0 %v2243_v51  ;;  %948 = vmatpush.bf16.msra.mxu2 %v2247_v53  ;;  %v2351_v51 = vor.u32 %v3179_v42, %v2348_v43  ;;  %v3175_v53 = vld [vmem:[%s5084_s1 + $0x1b4] sm:$0xf0]  ;;  %v2219_v35 = vor.u32 %v3151_v27, %v2218_v26  ;;  %v3139_v43 = vld [vmem:[%s5084_s1 + $0x9c] sm:$0xf]  ;;  %v2714_v26 = vld [vmem:[%s5086_s3 + $0xd0] sm:$0xf] }
  0x53   :  { %935 = vmatpush.bf16.msra.mxu1 %v2499_v52  ;;  %961 = vmatpush.bf16.msra.mxu3 %v2503_v59  ;;  %v2314_v52 = vld [vmem:[%s5084_s1 + $0x198] sm:$0xf]  ;;  %v3171_v59 = vld [vmem:[%s5084_s1 + $0x19c] sm:$0xf] }
  0x54   :  { %v2315_v63 = vor.u32 %v3175_v53, %v2314_v52  ;;  %v3143_v39 = vld [vmem:[%s5084_s1 + $0xb4] sm:$0xf0]  ;;  %v2444_v46 = vld [vmem:[%s5084_s1 + $0x2b8] sm:$0xf0] }
  0x55   :  { %v3207_v42 = vld [vmem:[%s5084_s1 + $0x2b4] sm:$0xf0]  ;;  %v2187_v47 = vor.u32 %v3143_v39, %v2186_v38  ;;  %v2156_v58 = vld [vmem:[%s5084_s1 + $0x78] sm:$0xf0]  ;;  %v2698_v38 = vld [vmem:[%s5086_s3 + $0xb0] sm:$0xf] }
  0x56   :  { %923 = vmatpush.bf16.msra.mxu0 %v2211_v1  ;;  %949 = vmatpush.bf16.msra.mxu2 %v2215_v3  ;;  %v2319_v1 = vor.u32 %v3171_v59, %v2316_v60  ;;  %v3167_v3 = vld [vmem:[%s5084_s1 + $0x174] sm:$0xf0]  ;;  %v3195_v59 = vld [vmem:[%s5084_s1 + $0x25c] sm:$0xf] }
  0x57   :  { %936 = vmatpush.bf16.msra.mxu1 %v2467_v2  ;;  %962 = vmatpush.bf16.msra.mxu3 %v2471_v7  ;;  %v2282_v2 = vld [vmem:[%s5084_s1 + $0x158] sm:$0xf]  ;;  %v3163_v7 = vld [vmem:[%s5084_s1 + $0x15c] sm:$0xf] }
  0x58   :  { %v2283_v11 = vor.u32 %v3167_v3, %v2282_v2  ;;  %v2410_v52 = vld [vmem:[%s5084_s1 + $0x258] sm:$0xf]  ;;  %v2412_v60 = vld [vmem:[%s5084_s1 + $0x278] sm:$0xf0] }
  0x59   :  { %v3199_v54 = vld [vmem:[%s5084_s1 + $0x274] sm:$0xf0]  ;;  %v2415_v4 = vor.u32 %v3195_v59, %v2412_v60  ;;  %v2124_v6 = vld [vmem:[%s5084_s1 + $0x38] sm:$0xf0]  ;;  %v2610_v60 = vld [vmem:[%s5086_s3] sm:$0xf] }
  0x5a   :  { %924 = vmatpush.bf16.msra.mxu0 %v2179_v13  ;;  %950 = vmatpush.bf16.msra.mxu2 %v2183_v15  ;;  %v2287_v13 = vor.u32 %v3163_v7, %v2284_v8  ;;  %v3159_v15 = vld [vmem:[%s5084_s1 + $0x134] sm:$0xf0]  ;;  %v3187_v7 = vld [vmem:[%s5084_s1 + $0x21c] sm:$0xf] }
  0x5b   :  { %937 = vmatpush.bf16.msra.mxu1 %v2435_v14  ;;  %963 = vmatpush.bf16.msra.mxu3 %v2439_v19  ;;  %v2250_v14 = vld [vmem:[%s5084_s1 + $0x118] sm:$0xf]  ;;  %v3155_v19 = vld [vmem:[%s5084_s1 + $0x11c] sm:$0xf] }
  0x5c   :  { %v2251_v23 = vor.u32 %v3159_v15, %v2250_v14  ;;  %v2122_v62 = vld [vmem:[%s5084_s1 + $0x18] sm:$0xf]  ;;  %v2380_v8 = vld [vmem:[%s5084_s1 + $0x238] sm:$0xf0] }
  0x5d   :  { %v2378_v2 = vld [vmem:[%s5084_s1 + $0x218] sm:$0xf]  ;;  %v2383_v14 = vor.u32 %v3187_v7, %v2380_v8  ;;  %v2674_v8 = vld [vmem:[%s5086_s3 + $0x80] sm:$0xf] }
  0x5e   :  { %925 = vmatpush.bf16.msra.mxu0 %v2147_v25  ;;  %951 = vmatpush.bf16.msra.mxu2 %v2151_v29  ;;  %v2255_v25 = vor.u32 %v3155_v19, %v2252_v20  ;;  %v2511_v29 = vor.u32 %v3219_v21, %v2508_v22  ;;  %v3191_v3 = vld [vmem:[%s5084_s1 + $0x234] sm:$0xf0]  ;;  %v2658_v19 = vld [vmem:[%s5086_s3 + $0x60] sm:$0xf]  ;;  %v3277_v21 = vld [vmem:[%s5086_s3 + $0xe4] sm:$0xf0] }
  0x5f   :  { %938 = vmatpush.bf16.msra.mxu1 %v2403_v28  ;;  %964 = vmatpush.bf16.msra.mxu3 %v2407_v33  ;;  %v2474_v28 = vld [vmem:[%s5084_s1 + $0x2d8] sm:$0xf]  ;;  %v3211_v33 = vld [vmem:[%s5084_s1 + $0x2dc] sm:$0xf] }
  0x60   :  { %v2475_v36 = vor.u32 %v3215_v30, %v2474_v28  ;;  %v2479_v41 = vor.u32 %v3211_v33, %v2476_v34  ;;  %v3263_v10 = vld [vmem:[%s5086_s3 + $0x74] sm:$0xf0]  ;;  %v3257_v30 = vld [vmem:[%s5086_s3 + $0x44] sm:$0xf0] }
  0x61   :  { %v2667_v15 = vor.u32 %v3263_v10, %v2666_v9  ;;  %v3275_v27 = vld [vmem:[%s5086_s3 + $0xd4] sm:$0xf0]  ;;  %v3273_v33 = vld [vmem:[%s5086_s3 + $0xc4] sm:$0xf0] }
  0x62   :  { %926 = vmatpush.bf16.msra.mxu0 %v2115_v40  ;;  %952 = vmatpush.bf16.msra.mxu2 %v2119_v45  ;;  %v2442_v40 = vld [vmem:[%s5084_s1 + $0x298] sm:$0xf]  ;;  %v3203_v45 = vld [vmem:[%s5084_s1 + $0x29c] sm:$0xf]  ;;  %v2715_v28 = vor.u32 %v3275_v27, %v2714_v26  ;;  %v2707_v34 = vor.u32 %v3273_v33, %v2706_v32  ;;  %v3265_v9 = vld [vmem:[%s5086_s3 + $0x84] sm:$0xf0] }
  0x63   :  { %939 = vmatpush.bf16.msra.mxu1 %v2371_v44  ;;  %965 = vmatpush.bf16.msra.mxu3 %v2375_v48  ;;  %v2188_v44 = vld [vmem:[%s5084_s1 + $0xb8] sm:$0xf0]  ;;  %v2443_v48 = vor.u32 %v3207_v42, %v2442_v40  ;;  %v2447_v53 = vor.u32 %v3203_v45, %v2444_v46  ;;  %v3271_v39 = vld [vmem:[%s5086_s3 + $0xb4] sm:$0xf0]  ;;  %v2626_v40 = vld [vmem:[%s5086_s3 + $0x20] sm:$0xf] }
  0x64   :  { %v3253_v42 = vld [vmem:[%s5086_s3 + $0x24] sm:$0xf0]  ;;  %v2618_v46 = vld [vmem:[%s5086_s3 + $0x10] sm:$0xf]  ;;  %v2850_v27 = vld [vmem:[%s5086_s3 + $0x1e0] sm:$0xf] }
  0x65   :  { %927 = vmatmul.bf16.vlgmr.msra.gmra.mxu0 %v3665_v55  ;;  %953 = vmatmul.bf16.vlgmr.msra.gmra.mxu2 %v3665_v55  ;;  %v2627_v45 = vor.u32 %v3253_v42, %v2626_v40  ;;  %v3323_v32 = vld [vmem:[%s5086_s3 + $0x254] sm:$0xf0]  ;;  %v3341_v42 = vld [vmem:[%s5086_s3 + $0x2e4] sm:$0xf0] }
  0x66   :  { %971 = vmatpush.bf16.msrb.mxu0 %v2347_v49  ;;  %997 = vmatpush.bf16.msrb.mxu2 %v2351_v51  ;;  %v2191_v49 = vor.u32 %v3139_v43, %v2188_v44  ;;  %v3135_v51 = vld [vmem:[%s5084_s1 + $0x74] sm:$0xf0]  ;;  %v2690_v43 = vld [vmem:[%s5086_s3 + $0xa0] sm:$0xf]  ;;  %v3269_v44 = vld [vmem:[%s5086_s3 + $0xa4] sm:$0xf0] }
  0x67   :  { %984 = vmatpush.bf16.msrb.mxu1 %v2603_v50  ;;  %1010 = vmatpush.bf16.msrb.mxu3 %v2607_v57  ;;  %v2154_v50 = vld [vmem:[%s5084_s1 + $0x58] sm:$0xf]  ;;  %v3131_v57 = vld [vmem:[%s5084_s1 + $0x5c] sm:$0xf] }
  0x68   :  { %940 = vmatmul.bf16.vlgmr.msra.gmra.mxu1 %v3667_v56  ;;  %966 = vmatmul.bf16.vlgmr.msra.gmra.mxu3 %v3667_v56  ;;  %v2155_v61 = vor.u32 %v3135_v51, %v2154_v50  ;;  %v2691_v50 = vor.u32 %v3269_v44, %v2690_v43 }
  0x6a   :  { %972 = vmatpush.bf16.msrb.mxu0 %v2315_v63  ;;  %998 = vmatpush.bf16.msrb.mxu2 %v2319_v1  ;;  %v2411_v63 = vor.u32 %v3199_v54, %v2410_v52  ;;  %v3127_v1 = vld [vmem:[%s5084_s1 + $0x34] sm:$0xf0] }
  0x6b   :  { %985 = vmatpush.bf16.msrb.mxu1 %v2571_v0  ;;  %1011 = vmatpush.bf16.msrb.mxu3 %v2575_v5  ;;  %v2159_v0 = vor.u32 %v3131_v57, %v2156_v58  ;;  %v3123_v5 = vld [vmem:[%s5084_s1 + $0x1c] sm:$0xf]  ;;  %v2682_v57 = vld [vmem:[%s5086_s3 + $0x90] sm:$0xf]  ;;  %v3267_v58 = vld [vmem:[%s5086_s3 + $0x94] sm:$0xf0] }
  0x6c   :  { %v2683_v59 = vor.u32 %v3267_v58, %v2682_v57  ;;  %v3287_v57 = vld [vmem:[%s5086_s3 + $0x134] sm:$0xf0] }
  0x6e   :  { %973 = vmatpush.bf16.msrb.mxu0 %v2283_v11  ;;  %999 = vmatpush.bf16.msrb.mxu2 %v2287_v13  ;;  %v2123_v11 = vor.u32 %v3127_v1, %v2122_v62  ;;  %v2127_v13 = vor.u32 %v3123_v5, %v2124_v6 }
  0x6f   :  { %986 = vmatpush.bf16.msrb.mxu1 %v2539_v12  ;;  %1012 = vmatpush.bf16.msrb.mxu3 %v2543_v17  ;;  %v2379_v12 = vor.u32 %v3191_v3, %v2378_v2  ;;  %v3279_v17 = vld [vmem:[%s5086_s3 + $0xf4] sm:$0xf0]  ;;  %v2786_v3 = vld [vmem:[%s5086_s3 + $0x160] sm:$0xf] }
  0x70   :  { %v2731_v18 = vor.u32 %v3279_v17, %v2730_v16  ;;  %v2914_v16 = vld [vmem:[%s5086_s3 + $0x260] sm:$0xf]  ;;  %v3325_v17 = vld [vmem:[%s5086_s3 + $0x264] sm:$0xf0] }
  0x72   :  { %974 = vmatpush.bf16.msrb.mxu0 %v2251_v23  ;;  %1000 = vmatpush.bf16.msrb.mxu2 %v2255_v25  ;;  %v2650_v23 = vld [vmem:[%s5086_s3 + $0x50] sm:$0xf] }
  0x73   :  { %987 = vmatpush.bf16.msrb.mxu1 %v2507_v24  ;;  %1013 = vmatpush.bf16.msrb.mxu3 %v2511_v29  ;;  %v3259_v24 = vld [vmem:[%s5086_s3 + $0x54] sm:$0xf0]  ;;  %v2642_v29 = vld [vmem:[%s5086_s3 + $0x40] sm:$0xf] }
  0x74   :  { %v2651_v25 = vor.u32 %v3259_v24, %v2650_v23  ;;  %v2643_v31 = vor.u32 %v3257_v30, %v2642_v29  ;;  %v3343_v23 = vld [vmem:[%s5086_s3 + $0x2f4] sm:$0xf0] }
  0x76   :  { %975 = vmatpush.bf16.msrb.mxu0 %v2219_v35  ;;  %1001 = vmatpush.bf16.msrb.mxu2 %v2223_v37  ;;  %v2634_v35 = vld [vmem:[%s5086_s3 + $0x30] sm:$0xf] }
  0x77   :  { %988 = vmatpush.bf16.msrb.mxu1 %v2475_v36  ;;  %1014 = vmatpush.bf16.msrb.mxu3 %v2479_v41  ;;  %v3255_v36 = vld [vmem:[%s5086_s3 + $0x34] sm:$0xf0]  ;;  %v2699_v41 = vor.u32 %v3271_v39, %v2698_v38 }
  0x78   :  { %v2635_v37 = vor.u32 %v3255_v36, %v2634_v35  ;;  %v2770_v36 = vld [vmem:[%s5086_s3 + $0x140] sm:$0xf] }
  0x7a   :  { %976 = vmatpush.bf16.msrb.mxu0 %v2187_v47  ;;  %1002 = vmatpush.bf16.msrb.mxu2 %v2191_v49  ;;  %v3251_v47 = vld [vmem:[%s5086_s3 + $0x14] sm:$0xf0] }
  0x7b   :  { %989 = vmatpush.bf16.msrb.mxu1 %v2443_v48  ;;  %1015 = vmatpush.bf16.msrb.mxu3 %v2447_v53  ;;  %v2794_v48 = vld [vmem:[%s5086_s3 + $0x170] sm:$0xf]  ;;  %v3295_v49 = vld [vmem:[%s5086_s3 + $0x174] sm:$0xf0]  ;;  %v2619_v52 = vor.u32 %v3251_v47, %v2618_v46  ;;  %v4300_v53 = vld [vmem:[%s5087_s2] sm:$0xff] }
  0x7c   :  { %v2795_v51 = vor.u32 %v3295_v49, %v2794_v48  ;;  %v159_v54 = vperm.slane %v4300_v53, 0  ;;  %v160_v10 = vperm.slane %v4300_v53, 1  ;;  %v3307_v46 = vld [vmem:[%s5086_s3 + $0x1d4] sm:$0xf0]  ;;  %v2898_v49 = vld [vmem:[%s5086_s3 + $0x240] sm:$0xf] }
  0x7e   :  { %977 = vmatpush.bf16.msrb.mxu0 %v2155_v61  ;;  %1003 = vmatpush.bf16.msrb.mxu2 %v2159_v0  ;;  %v3249_v61 = vld [vmem:[%s5086_s3 + $0x4] sm:$0xf0]  ;;  %v3327_v0 = vld [vmem:[%s5086_s3 + $0x274] sm:$0xf0] }
  0x7f   :  { %990 = vmatpush.bf16.msrb.mxu1 %v2411_v63  ;;  %1016 = vmatpush.bf16.msrb.mxu3 %v2415_v4  ;;  %v2611_v62 = vor.u32 %v3249_v61, %v2610_v60  ;;  %v2922_v63 = vld [vmem:[%s5086_s3 + $0x270] sm:$0xf]  ;;  %v3293_v4 = vld [vmem:[%s5086_s3 + $0x164] sm:$0xf0] }
  0x80   :  { %v2923_v2 = vor.u32 %v3327_v0, %v2922_v63  ;;  %v2787_v7 = vor.u32 %v3293_v4, %v2786_v3  ;;  %v2970_v61 = vld [vmem:[%s5086_s3 + $0x2d0] sm:$0xf]  ;;  %v3305_v3 = vld [vmem:[%s5086_s3 + $0x1c4] sm:$0xf0] }
  0x82   :  { %978 = vmatpush.bf16.msrb.mxu0 %v2123_v11  ;;  %1004 = vmatpush.bf16.msrb.mxu2 %v2127_v13  ;;  %v2675_v11 = vor.u32 %v3265_v9, %v2674_v8  ;;  %v3311_v13 = vld [vmem:[%s5086_s3 + $0x1f4] sm:$0xf0]  ;;  %v2754_v9 = vld [vmem:[%s5086_s3 + $0x120] sm:$0xf] }
  0x83   :  { %991 = vmatpush.bf16.msrb.mxu1 %v2379_v12  ;;  %1017 = vmatpush.bf16.msrb.mxu3 %v2383_v14  ;;  %v2858_v12 = vld [vmem:[%s5086_s3 + $0x1f0] sm:$0xf] }
  0x85   :  { %979 = vmatmul.bf16.vlgmr.msrb.gmra.mxu0 %v3665_v55  ;;  %1005 = vmatmul.bf16.vlgmr.msrb.gmra.mxu2 %v3665_v55  ;;  %v3261_v55 = vld [vmem:[%s5086_s3 + $0x64] sm:$0xf0] }
  0x86   :  { %1877 = vmatpush.bf16.msra.mxu0 %v2667_v15  ;;  %992 = vmatmul.bf16.vlgmr.msrb.gmra.mxu1 %v3667_v56  ;;  %v2659_v20 = vor.u32 %v3261_v55, %v2658_v19  ;;  %v2859_v15 = vor.u32 %v3311_v13, %v2858_v12  ;;  %v2778_v19 = vld [vmem:[%s5086_s3 + $0x150] sm:$0xf]  ;;  %v3291_v55 = vld [vmem:[%s5086_s3 + $0x154] sm:$0xf0]  ;;  %v2962_v12 = vld [vmem:[%s5086_s3 + $0x2c0] sm:$0xf] }
  0x87   :  { %1018 = vmatmul.bf16.vlgmr.msrb.gmra.mxu3 %v3667_v56  ;;  %1890 = vmatpush.bf16.msra.mxu1 %v2731_v18  ;;  %v2722_v56 = vld [vmem:[%s5086_s3 + $0xe0] sm:$0xf]  ;;  %v2915_v18 = vor.u32 %v3325_v17, %v2914_v16  ;;  %v3337_v13 = vld [vmem:[%s5086_s3 + $0x2c4] sm:$0xf0]  ;;  %v2826_v17 = vld [vmem:[%s5086_s3 + $0x1b0] sm:$0xf] }
  0x88   :  { %v2723_v22 = vor.u32 %v3277_v21, %v2722_v56  ;;  %1903 = vmatpush.bf16.msra.mxu2 %v2795_v51  ;;  %1916 = vmatpush.bf16.msra.mxu3 %v2859_v15  ;;  %v2779_v21 = vor.u32 %v3291_v55, %v2778_v19  ;;  %v2963_v16 = vor.u32 %v3337_v13, %v2962_v12  ;;  %v2882_v55 = vld [vmem:[%s5086_s3 + $0x220] sm:$0xf]  ;;  %v3357_v12 = vld [vmem:[%s5086_s3 + $0x364] sm:$0xf0]  ;;  %v3260_v13 = vld [vmem:[%s5086_s3 + $0x64] sm:$0xf] }
  0x8a   :  { %1878 = vmatpush.bf16.msra.mxu0 %v2659_v20 }
  0x8b   :  { %1891 = vmatpush.bf16.msra.mxu1 %v2723_v22  ;;  %v2986_v22 = vld [vmem:[%s5086_s3 + $0x2f0] sm:$0xf] }
  0x8c   :  { %1904 = vmatpush.bf16.msra.mxu2 %v2787_v7  ;;  %v2987_v26 = vor.u32 %v3343_v23, %v2986_v22  ;;  %v3283_v22 = vld [vmem:[%s5086_s3 + $0x114] sm:$0xf0]  ;;  %v2954_v23 = vld [vmem:[%s5086_s3 + $0x2b0] sm:$0xf] }
  0x8e   :  { %1879 = vmatpush.bf16.msra.mxu0 %v2651_v25 }
  0x8f   :  { %1892 = vmatpush.bf16.msra.mxu1 %v2715_v28  ;;  %v3309_v28 = vld [vmem:[%s5086_s3 + $0x1e4] sm:$0xf0] }
  0x90   :  { %1905 = vmatpush.bf16.msra.mxu2 %v2779_v21  ;;  %v2851_v30 = vor.u32 %v3309_v28, %v2850_v27  ;;  %v2818_v28 = vld [vmem:[%s5086_s3 + $0x1a0] sm:$0xf] }
  0x92   :  { %1880 = vmatpush.bf16.msra.mxu0 %v2643_v31  ;;  %v2906_v31 = vld [vmem:[%s5086_s3 + $0x250] sm:$0xf]  ;;  %1917 = vmatpush.bf16.msra.mxu3 %v2851_v30 }
  0x93   :  { %1893 = vmatpush.bf16.msra.mxu1 %v2707_v34  ;;  %v2907_v35 = vor.u32 %v3323_v32, %v2906_v31  ;;  %v2874_v30 = vld [vmem:[%s5086_s3 + $0x210] sm:$0xf] }
  0x96   :  { %1881 = vmatpush.bf16.msra.mxu0 %v2635_v37  ;;  %v3289_v37 = vld [vmem:[%s5086_s3 + $0x144] sm:$0xf0] }
  0x97   :  { %1894 = vmatpush.bf16.msra.mxu1 %v2699_v41  ;;  %v2771_v40 = vor.u32 %v3289_v37, %v2770_v36  ;;  %v2978_v41 = vld [vmem:[%s5086_s3 + $0x2e0] sm:$0xf]  ;;  %v3281_v37 = vld [vmem:[%s5086_s3 + $0x104] sm:$0xf0] }
  0x98   :  { %v2979_v44 = vor.u32 %v3341_v42, %v2978_v41 }
  0x99   :  { %1906 = vmatpush.bf16.msra.mxu2 %v2771_v40 }
  0x9a   :  { %1882 = vmatpush.bf16.msra.mxu0 %v2627_v45  ;;  %v2842_v45 = vld [vmem:[%s5086_s3 + $0x1d0] sm:$0xf] }
  0x9b   :  { %1895 = vmatpush.bf16.msra.mxu1 %v2691_v50  ;;  %v2843_v48 = vor.u32 %v3307_v46, %v2842_v45  ;;  %v3321_v50 = vld [vmem:[%s5086_s3 + $0x244] sm:$0xf0]  ;;  %v2810_v46 = vld [vmem:[%s5086_s3 + $0x190] sm:$0xf] }
  0x9d   :  { %1918 = vmatpush.bf16.msra.mxu3 %v2843_v48 }
  0x9e   :  { %1883 = vmatpush.bf16.msra.mxu0 %v2619_v52  ;;  %v2899_v52 = vor.u32 %v3321_v50, %v2898_v49  ;;  %v2866_v50 = vld [vmem:[%s5086_s3 + $0x200] sm:$0xf] }
  0x9f   :  { %1896 = vmatpush.bf16.msra.mxu1 %v2683_v59 }
  0xa2   :  { %1884 = vmatpush.bf16.msra.mxu0 %v2611_v62  ;;  %v3339_v62 = vld [vmem:[%s5086_s3 + $0x2d4] sm:$0xf0] }
  0xa3   :  { %1897 = vmatpush.bf16.msra.mxu1 %v2675_v11 }
  0xa6   :  { %1929 = vmatpush.bf16.msrb.mxu0 %v2923_v2  ;;  %v2834_v2 = vld [vmem:[%s5086_s3 + $0x1c0] sm:$0xf] }
  0xa7   :  { %1942 = vmatpush.bf16.msrb.mxu1 %v2987_v26  ;;  %v2835_v4 = vor.u32 %v3305_v3, %v2834_v2  ;;  %v3331_v3 = vld [vmem:[%s5086_s3 + $0x294] sm:$0xf0] }
  0xa9   :  { %1919 = vmatpush.bf16.msra.mxu3 %v2835_v4  ;;  %v2802_v4 = vld [vmem:[%s5086_s3 + $0x180] sm:$0xf] }
  0xaa   :  { %v824_v1 = vpop.f32.mrf.mxu0  ;;  %v837_v6 = vpop.f32.mrf.mxu1  ;;  %1930 = vmatpush.bf16.msrb.mxu0 %v2915_v18  ;;  %v3303_v18 = vld [vmem:[%s5086_s3 + $0x1b4] sm:$0xf0] }
  0xab   :  { %v825_v5 = vadd.f32 %v824_v1, %v159_v54  ;;  %1943 = vmatpush.bf16.msrb.mxu1 %v2979_v44  ;;  %v2762_v54 = vld [vmem:[%s5086_s3 + $0x130] sm:$0xf]  ;;  %v2971_v1 = vor.u32 %v3339_v62, %v2970_v61  ;;  %v2827_v19 = vor.u32 %v3303_v18, %v2826_v17  ;;  %v161_v44 = vperm.slane %v4300_v53, 2  ;;  %v2668_v62 = vld [vmem:[%s5086_s3 + $0x78] sm:$0xf0] }
  0xac   :  { %v2763_v60 = vor.u32 %v3287_v57, %v2762_v54  ;;  %v3050_v54 = vld [vmem:[%s5086_s3 + $0x370] sm:$0xf]  ;;  %v3359_v57 = vld [vmem:[%s5086_s3 + $0x374] sm:$0xf0]  ;;  %v2930_v17 = vld [vmem:[%s5086_s3 + $0x280] sm:$0xf] }
  0xad   :  { %v4340_v14 = vadd.f32 %v837_v6, %v825_v5  ;;  %v2890_v5 = vld [vmem:[%s5086_s3 + $0x230] sm:$0xf]  ;;  %v3319_v6 = vld [vmem:[%s5086_s3 + $0x234] sm:$0xf0]  ;;  %1920 = vmatpush.bf16.msra.mxu3 %v2827_v19  ;;  %v3051_v61 = vor.u32 %v3359_v57, %v3050_v54  ;;  %v3329_v18 = vld [vmem:[%s5086_s3 + $0x284] sm:$0xf0] }
  0xae   :  { %1931 = vmatpush.bf16.msrb.mxu0 %v2907_v35  ;;  %1907 = vmatpush.bf16.msra.mxu2 %v2763_v60  ;;  %v2891_v8 = vor.u32 %v3319_v6, %v2890_v5  ;;  %v2738_v35 = vld [vmem:[%s5086_s3 + $0x100] sm:$0xf]  ;;  %v3297_v5 = vld [vmem:[%s5086_s3 + $0x184] sm:$0xf0]  ;;  %v162_v6 = vperm.slane %v4300_v53, 3 }
  0xaf   :  { %v1023_v20 = vmul.f32 %v4340_v14, %v4340_v14  ;;  %v850_v56 = vpop.f32.mrf.mxu2  ;;  %v863_v25 = vpop.f32.mrf.mxu3  ;;  %1944 = vmatpush.bf16.msrb.mxu1 %v2971_v1  ;;  %v2739_v41 = vor.u32 %v3281_v37, %v2738_v35  ;;  %v2644_v54 = vld [vmem:[%s5086_s3 + $0x48] sm:$0xf0] }
  0xb0   :  { %v851_v24 = vadd.f32 %v850_v56, %v160_v10  ;;  %v3285_v10 = vld [vmem:[%s5086_s3 + $0x124] sm:$0xf0]  ;;  %v2746_v56 = vld [vmem:[%s5086_s3 + $0x110] sm:$0xf] }
  0xb1   :  { %v1031_v29 = vmul.f32 %v1023_v20, %v4340_v14  ;;  %v2755_v11 = vor.u32 %v3285_v10, %v2754_v9  ;;  %v3317_v20 = vld [vmem:[%s5086_s3 + $0x224] sm:$0xf0]  ;;  %v2747_v26 = vor.u32 %v3283_v22, %v2746_v56  ;;  %v2803_v9 = vor.u32 %v3297_v5, %v2802_v4  ;;  %v3114_v56 = vld [vmem:[%s5086_s3 + $0x3f0] sm:$0xf]  ;;  %v3351_v4 = vld [vmem:[%s5086_s3 + $0x334] sm:$0xf0] }
  0xb2   :  { %v4375_v33 = vadd.f32 %v863_v25, %v851_v24  ;;  %v826_v34 = vpop.f32.mrf.mxu0  ;;  %v839_v39 = vpop.f32.mrf.mxu1  ;;  %1932 = vmatpush.bf16.msrb.mxu0 %v2899_v52  ;;  %v2883_v21 = vor.u32 %v3317_v20, %v2882_v55  ;;  %v3335_v24 = vld [vmem:[%s5086_s3 + $0x2b4] sm:$0xf0]  ;;  %v2931_v20 = vor.u32 %v3329_v18, %v2930_v17  ;;  %v3254_v5 = vld [vmem:[%s5086_s3 + $0x34] sm:$0xf]  ;;  %v2708_v18 = vld [vmem:[%s5086_s3 + $0xc8] sm:$0xf0] }
  0xb3   :  { %v1039_v38 = vmul.f32 0.044715, %v1031_v29  ;;  %1908 = vmatpush.bf16.msra.mxu2 %v2755_v11  ;;  %1945 = vmatpush.bf16.msrb.mxu1 %v2963_v16  ;;  %v2955_v27 = vor.u32 %v3335_v24, %v2954_v23  ;;  %v3301_v29 = vld [vmem:[%s5086_s3 + $0x1a4] sm:$0xf0]  ;;  %v3315_v34 = vld [vmem:[%s5086_s3 + $0x214] sm:$0xf0] }
  0xb4   :  { %v1024_v43 = vmul.f32 %v4375_v33, %v4375_v33  ;;  %v2819_v32 = vor.u32 %v3301_v29, %v2818_v28  ;;  %v2875_v36 = vor.u32 %v3315_v34, %v2874_v30  ;;  %v3333_v39 = vld [vmem:[%s5086_s3 + $0x2a4] sm:$0xf0]  ;;  %v3042_v11 = vld [vmem:[%s5086_s3 + $0x360] sm:$0xf]  ;;  %v2660_v16 = vld [vmem:[%s5086_s3 + $0x68] sm:$0xf0] }
  0xb5   :  { %v1047_v47 = vadd.f32 %v1039_v38, %v4340_v14  ;;  %v2946_v38 = vld [vmem:[%s5086_s3 + $0x2a0] sm:$0xf]  ;;  %v2663_v55 = vor.u32 %v3260_v13, %v2660_v16  ;;  %v3278_v23 = vld [vmem:[%s5086_s3 + $0xf4] sm:$0xf]  ;;  %v2732_v24 = vld [vmem:[%s5086_s3 + $0xf8] sm:$0xf0] }
  0xb6   :  { %v1032_v51 = vmul.f32 %v1024_v43, %v4375_v33  ;;  %1933 = vmatpush.bf16.msrb.mxu0 %v2891_v8  ;;  %v2947_v42 = vor.u32 %v3333_v39, %v2946_v38  ;;  %1921 = vmatpush.bf16.msra.mxu3 %v2819_v32  ;;  %v3034_v28 = vld [vmem:[%s5086_s3 + $0x350] sm:$0xf]  ;;  %v3355_v29 = vld [vmem:[%s5086_s3 + $0x354] sm:$0xf0]  ;;  %v3258_v30 = vld [vmem:[%s5086_s3 + $0x54] sm:$0xf] }
  0xb7   :  { %v1055_v58 = vmul.f32 0.7978846, %v1047_v47  ;;  %v852_v59 = vpop.f32.mrf.mxu2  ;;  %v865_v0 = vpop.f32.mrf.mxu3  ;;  %1909 = vmatpush.bf16.msra.mxu2 %v2747_v26  ;;  %1946 = vmatpush.bf16.msrb.mxu1 %v2955_v27  ;;  %v3299_v47 = vld [vmem:[%s5086_s3 + $0x194] sm:$0xf0]  ;;  %v2735_v27 = vor.u32 %v3278_v23, %v2732_v24  ;;  %v3035_v35 = vor.u32 %v3355_v29, %v3034_v28  ;;  %v3369_v13 = vld [vmem:[%s5086_s3 + $0x3c4] sm:$0xf0] }
  0xb8   :  { %v1040_v63 = vmul.f32 0.044715, %v1032_v51  ;;  %v2811_v49 = vor.u32 %v3299_v47, %v2810_v46  ;;  %v2628_v23 = vld [vmem:[%s5086_s3 + $0x28] sm:$0xf0]  ;;  %v3082_v24 = vld [vmem:[%s5086_s3 + $0x3b0] sm:$0xf] }
  0xb9   :  { %3376 = vtanh.f32 %v1055_v58  ;;  %v3262_v58 = vld [vmem:[%s5086_s3 + $0x74] sm:$0xf]  ;;  %v2700_v29 = vld [vmem:[%s5086_s3 + $0xb8] sm:$0xf0] }
  0xba   :  { %v1048_v7 = vadd.f32 %v1040_v63, %v4375_v33  ;;  %1934 = vmatpush.bf16.msrb.mxu0 %v2883_v21  ;;  %1922 = vmatpush.bf16.msra.mxu3 %v2811_v49  ;;  %v2938_v63 = vld [vmem:[%s5086_s3 + $0x290] sm:$0xf]  ;;  %v2671_v2 = vor.u32 %v3262_v58, %v2668_v62  ;;  %v3375_v21 = vld [vmem:[%s5086_s3 + $0x3f4] sm:$0xf0]  ;;  %v3353_v49 = vld [vmem:[%s5086_s3 + $0x344] sm:$0xf0] }
  0xbb   :  { %1910 = vmatpush.bf16.msra.mxu2 %v2739_v41  ;;  %1947 = vmatpush.bf16.msrb.mxu1 %v2947_v42  ;;  %v2939_v8 = vor.u32 %v3331_v3, %v2938_v63  ;;  %v3115_v22 = vor.u32 %v3375_v21, %v3114_v56  ;;  %v3373_v41 = vld [vmem:[%s5086_s3 + $0x3e4] sm:$0xf0]  ;;  %v3274_v63 = vld [vmem:[%s5086_s3 + $0xd4] sm:$0xf]  ;;  %v3018_v3 = vld [vmem:[%s5086_s3 + $0x330] sm:$0xf] }
  0xbc   :  { %v1056_v15 = vmul.f32 0.7978846, %v1048_v7  ;;  %v3252_v56 = vld [vmem:[%s5086_s3 + $0x24] sm:$0xf]  ;;  %v3270_v28 = vld [vmem:[%s5086_s3 + $0xb4] sm:$0xf] }
  0xbe   :  { %3378 = vtanh.f32 %v1056_v15  ;;  %1935 = vmatpush.bf16.msrb.mxu0 %v2875_v36  ;;  %1923 = vmatpush.bf16.msra.mxu3 %v2803_v9  ;;  %v3043_v15 = vor.u32 %v3357_v12, %v3042_v11  ;;  %v2652_v36 = vld [vmem:[%s5086_s3 + $0x58] sm:$0xf0]  ;;  %v3090_v12 = vld [vmem:[%s5086_s3 + $0x3c0] sm:$0xf] }
  0xbf   :  { %v3377_v25 = vpop.eup %3376  ;;  %1955 = vmatpush.bf16.msrb.mxu2 %v3051_v61  ;;  %1948 = vmatpush.bf16.msrb.mxu1 %v2939_v8  ;;  %v2655_v39 = vor.u32 %v3258_v30, %v2652_v36  ;;  %v3019_v8 = vor.u32 %v3351_v4, %v3018_v3  ;;  %v2636_v9 = vld [vmem:[%s5086_s3 + $0x38] sm:$0xf0]  ;;  %v3091_v17 = vor.u32 %v3369_v13, %v3090_v12  ;;  %v3266_v3 = vld [vmem:[%s5086_s3 + $0x94] sm:$0xf]  ;;  %v2788_v12 = vld [vmem:[%s5086_s3 + $0x168] sm:$0xf0] }
  0xc0   :  { %v1071_v31 = vadd.f32 1.0, %v3377_v25  ;;  %v2639_v11 = vor.u32 %v3254_v5, %v2636_v9 }
  0xc2   :  { %v1079_v40 = vmul.f32 0.5, %v1071_v31  ;;  %v876_v59 = vpop.f32.mrf.mxu0  ;;  %1968 = vmatpush.bf16.msrb.mxu3 %v3115_v22 }
  0xc3   :  { %v877_v0 = vadd.f32 %v876_v59, %v161_v44  ;;  %1956 = vmatpush.bf16.msrb.mxu2 %v3043_v15  ;;  %1949 = vmatpush.bf16.msrb.mxu1 %v2931_v20  ;;  %v3276_v44 = vld [vmem:[%s5086_s3 + $0xe4] sm:$0xf]  ;;  %v3098_v59 = vld [vmem:[%s5086_s3 + $0x3d0] sm:$0xf]  ;;  %v3349_v20 = vld [vmem:[%s5086_s3 + $0x324] sm:$0xf0] }
  0xc4   :  { %v3379_v43 = vpop.eup %3378  ;;  %v1087_v45 = vmul.f32 %v1079_v40, %v4340_v14  ;;  %v3313_v14 = vld [vmem:[%s5086_s3 + $0x204] sm:$0xf0]  ;;  %v3106_v40 = vld [vmem:[%s5086_s3 + $0x3e0] sm:$0xf]  ;;  %v3272_v15 = vld [vmem:[%s5086_s3 + $0xc4] sm:$0xf] }
  0xc5   :  { %v1072_v48 = vadd.f32 1.0, %v3379_v43  ;;  %v2867_v52 = vor.u32 %v3313_v14, %v2866_v50  ;;  %v889_v1 = vpop.f32.mrf.mxu1  ;;  %v3107_v43 = vor.u32 %v3373_v41, %v3106_v40  ;;  %v3256_v50 = vld [vmem:[%s5086_s3 + $0x44] sm:$0xf] }
  0xc6   :  { %v4504_v51 = vpack.c.bf16 %v1087_v45, %v1087_v45  ;;  %v4533_v10 = vadd.f32 %v889_v1, %v877_v0  ;;  %v2724_v45 = vld [vmem:[%s5086_s3 + $0xe8] sm:$0xf0]  ;;  %v2647_v58 = vor.u32 %v3256_v50, %v2644_v54  ;;  %v2716_v0 = vld [vmem:[%s5086_s3 + $0xd8] sm:$0xf0]  ;;  %v2994_v50 = vld [vmem:[%s5086_s3 + $0x300] sm:$0xf] }
  0xc7   :  { %v1080_v60 = vmul.f32 0.5, %v1072_v48  ;;  %1936 = vmatpush.bf16.msrb.mxu0 %v2867_v52  ;;  %1957 = vmatpush.bf16.msrb.mxu2 %v3035_v35  ;;  %v2727_v47 = vor.u32 %v3276_v44, %v2724_v45  ;;  %v3026_v48 = vld [vmem:[%s5086_s3 + $0x340] sm:$0xf]  ;;  %v3347_v35 = vld [vmem:[%s5086_s3 + $0x314] sm:$0xf0] }
  0xc8   :  { %1885 = vmatmul.bf16.vlgmr.msra.gmra.mxu0 %v4504_v51  ;;  %v1025_v19 = vmul.f32 %v4533_v10, %v4533_v10  ;;  %v902_v26 = vpop.f32.mrf.mxu2  ;;  %1969 = vmatpush.bf16.msrb.mxu3 %v3107_v43  ;;  %v3027_v52 = vor.u32 %v3353_v49, %v3026_v48  ;;  %v3365_v43 = vld [vmem:[%s5086_s3 + $0x3a4] sm:$0xf0]  ;;  %v3268_v44 = vld [vmem:[%s5086_s3 + $0xa4] sm:$0xf] }
  0xc9   :  { %v1088_v7 = vmul.f32 %v1080_v60, %v4375_v33  ;;  %v903_v31 = vadd.f32 %v902_v26, %v162_v6  ;;  %v3371_v60 = vld [vmem:[%s5086_s3 + $0x3d4] sm:$0xf0]  ;;  %v2631_v26 = vor.u32 %v3252_v56, %v2628_v23  ;;  %v3310_v23 = vld [vmem:[%s5086_s3 + $0x1f4] sm:$0xf] }
  0xca   :  { %v1033_v25 = vmul.f32 %v1025_v19, %v4533_v10  ;;  %v878_v34 = vpop.f32.mrf.mxu0  ;;  %v3099_v62 = vor.u32 %v3371_v60, %v3098_v59  ;;  %v2711_v19 = vor.u32 %v3272_v15, %v2708_v18  ;;  %v3294_v59 = vld [vmem:[%s5086_s3 + $0x174] sm:$0xf]  ;;  %v2796_v60 = vld [vmem:[%s5086_s3 + $0x178] sm:$0xf0]  ;;  %v3361_v18 = vld [vmem:[%s5086_s3 + $0x384] sm:$0xf0] }
  0xcb   :  { %1981 = vmatpush.bf16.msra.mxu0 %v2671_v2  ;;  %v4544_v33 = vpack.c.bf16 %v1088_v7, %v1088_v7  ;;  %v915_v32 = vpop.f32.mrf.mxu3  ;;  %1958 = vmatpush.bf16.msrb.mxu2 %v3027_v52  ;;  %v2719_v2 = vor.u32 %v3274_v63, %v2716_v0  ;;  %v3002_v34 = vld [vmem:[%s5086_s3 + $0x310] sm:$0xf]  ;;  %v3248_v52 = vld [vmem:[%s5086_s3 + $0x4] sm:$0xf]  ;;  %v2799_v63 = vor.u32 %v3294_v59, %v2796_v60 }
  0xcc   :  { %v1041_v37 = vmul.f32 0.044715, %v1033_v25  ;;  %v4589_v42 = vadd.f32 %v915_v32, %v903_v31  ;;  %1970 = vmatpush.bf16.msrb.mxu3 %v3099_v62  ;;  %v2703_v32 = vor.u32 %v3270_v28, %v2700_v29  ;;  %v3003_v36 = vor.u32 %v3347_v35, %v3002_v34  ;;  %v3308_v35 = vld [vmem:[%s5086_s3 + $0x1e4] sm:$0xf] }
  0xcd   :  { %1898 = vmatmul.bf16.vlgmr.msra.gmra.mxu1 %v4544_v33  ;;  %v891_v38 = vpop.f32.mrf.mxu1 }
  0xce   :  { %1994 = vmatpush.bf16.msra.mxu1 %v2735_v27  ;;  %v1049_v46 = vadd.f32 %v1041_v37, %v4533_v10  ;;  %v1026_v14 = vmul.f32 %v4589_v42, %v4589_v42  ;;  %v3367_v27 = vld [vmem:[%s5086_s3 + $0x3b4] sm:$0xf0]  ;;  %v3250_v37 = vld [vmem:[%s5086_s3 + $0x14] sm:$0xf]  ;;  %v2620_v38 = vld [vmem:[%s5086_s3 + $0x18] sm:$0xf0] }
  0xcf   :  { %1982 = vmatpush.bf16.msra.mxu0 %v2663_v55  ;;  %1959 = vmatpush.bf16.msrb.mxu2 %v3019_v8  ;;  %v3010_v55 = vld [vmem:[%s5086_s3 + $0x320] sm:$0xf]  ;;  %v3083_v31 = vor.u32 %v3367_v27, %v3082_v24  ;;  %v2623_v41 = vor.u32 %v3250_v37, %v2620_v38  ;;  %v2684_v8 = vld [vmem:[%s5086_s3 + $0x98] sm:$0xf0] }
  0xd0   :  { %v1057_v57 = vmul.f32 0.7978846, %v1049_v46  ;;  %v1034_v61 = vmul.f32 %v1026_v14, %v4589_v42  ;;  %v904_v1 = vpop.f32.mrf.mxu2  ;;  %1971 = vmatpush.bf16.msrb.mxu3 %v3091_v17  ;;  %v3011_v22 = vor.u32 %v3349_v20, %v3010_v55  ;;  %v2692_v46 = vld [vmem:[%s5086_s3 + $0xa8] sm:$0xf0]  ;;  %v3345_v14 = vld [vmem:[%s5086_s3 + $0x304] sm:$0xf0]  ;;  %v2687_v9 = vor.u32 %v3266_v3, %v2684_v8 }
  0xd1   :  { %v2695_v49 = vor.u32 %v3268_v44, %v2692_v46  ;;  %v3066_v1 = vld [vmem:[%s5086_s3 + $0x390] sm:$0xf]  ;;  %v3058_v17 = vld [vmem:[%s5086_s3 + $0x380] sm:$0xf]  ;;  %v3264_v20 = vld [vmem:[%s5086_s3 + $0x84] sm:$0xf] }
  0xd2   :  { %1995 = vmatpush.bf16.msra.mxu1 %v2727_v47  ;;  %3380 = vtanh.f32 %v1057_v57  ;;  %v1042_v6 = vmul.f32 0.044715, %v1034_v61  ;;  %v163_v47 = vperm.slane %v4300_v53, 4  ;;  %v3059_v55 = vor.u32 %v3361_v18, %v3058_v17  ;;  %v2860_v24 = vld [vmem:[%s5086_s3 + $0x1f8] sm:$0xf0] }
  0xd3   :  { %1983 = vmatpush.bf16.msra.mxu0 %v2655_v39  ;;  %v917_v7 = vpop.f32.mrf.mxu3  ;;  %1960 = vmatpush.bf16.msrb.mxu2 %v3011_v22  ;;  %v3074_v39 = vld [vmem:[%s5086_s3 + $0x3a0] sm:$0xf]  ;;  %v2780_v27 = vld [vmem:[%s5086_s3 + $0x158] sm:$0xf0]  ;;  %v3300_v17 = vld [vmem:[%s5086_s3 + $0x1a4] sm:$0xf] }
  0xd4   :  { %v1050_v16 = vadd.f32 %v1042_v6, %v4589_v42  ;;  %1972 = vmatpush.bf16.msrb.mxu3 %v3083_v31  ;;  %v3075_v45 = vor.u32 %v3365_v43, %v3074_v39  ;;  %v2772_v43 = vld [vmem:[%s5086_s3 + $0x148] sm:$0xf0] }
  0xd6   :  { %1996 = vmatpush.bf16.msra.mxu1 %v2719_v2  ;;  %v1058_v21 = vmul.f32 0.7978846, %v1050_v16  ;;  %v3363_v2 = vld [vmem:[%s5086_s3 + $0x394] sm:$0xf0] }
  0xd7   :  { %1984 = vmatpush.bf16.msra.mxu0 %v2647_v58  ;;  %1961 = vmatpush.bf16.msrb.mxu2 %v3003_v36  ;;  %v2612_v58 = vld [vmem:[%s5086_s3 + $0x8] sm:$0xf0]  ;;  %v3067_v7 = vor.u32 %v3363_v2, %v3066_v1  ;;  %v3284_v1 = vld [vmem:[%s5086_s3 + $0x124] sm:$0xf] }
  0xd8   :  { %v3381_v25 = vpop.eup %3380  ;;  %3382 = vtanh.f32 %v1058_v21  ;;  %1973 = vmatpush.bf16.msrb.mxu3 %v3075_v45  ;;  %v2615_v62 = vor.u32 %v3248_v52, %v2612_v58  ;;  %v2852_v36 = vld [vmem:[%s5086_s3 + $0x1e8] sm:$0xf0]  ;;  %v3286_v52 = vld [vmem:[%s5086_s3 + $0x134] sm:$0xf] }
  0xd9   :  { %v1073_v30 = vadd.f32 1.0, %v3381_v25  ;;  %v2863_v25 = vor.u32 %v3310_v23, %v2860_v24  ;;  %v2855_v39 = vor.u32 %v3308_v35, %v2852_v36  ;;  %v2756_v2 = vld [vmem:[%s5086_s3 + $0x128] sm:$0xf0] }
  0xda   :  { %1997 = vmatpush.bf16.msra.mxu1 %v2711_v19  ;;  %v164_v19 = vperm.slane %v4300_v53, 5  ;;  %v2759_v3 = vor.u32 %v3284_v1, %v2756_v2  ;;  %v2740_v23 = vld [vmem:[%s5086_s3 + $0x108] sm:$0xf0] }
  0xdb   :  { %1985 = vmatpush.bf16.msra.mxu0 %v2639_v11  ;;  %v1081_v40 = vmul.f32 0.5, %v1073_v30  ;;  %v3292_v11 = vld [vmem:[%s5086_s3 + $0x164] sm:$0xf] }
  0xdc   :  { %1974 = vmatpush.bf16.msrb.mxu3 %v3067_v7  ;;  %v2791_v16 = vor.u32 %v3292_v11, %v2788_v12  ;;  %v3282_v11 = vld [vmem:[%s5086_s3 + $0x114] sm:$0xf]  ;;  %v2748_v12 = vld [vmem:[%s5086_s3 + $0x118] sm:$0xf0] }
  0xdd   :  { %v1089_v48 = vmul.f32 %v1081_v40, %v4533_v10  ;;  %v2995_v10 = vor.u32 %v3345_v14, %v2994_v50 }
  0xde   :  { %1998 = vmatpush.bf16.msra.mxu1 %v2703_v32  ;;  %v3383_v54 = vpop.eup %3382 }
  0xdf   :  { %1986 = vmatpush.bf16.msra.mxu0 %v2631_v26  ;;  %v4709_v57 = vpack.c.bf16 %v1089_v48, %v1089_v48  ;;  %v1074_v61 = vadd.f32 1.0, %v3383_v54  ;;  %1962 = vmatpush.bf16.msrb.mxu2 %v2995_v10  ;;  %v3290_v26 = vld [vmem:[%s5086_s3 + $0x154] sm:$0xf]  ;;  %v2844_v48 = vld [vmem:[%s5086_s3 + $0x1d8] sm:$0xf0] }
  0xe0   :  { %v2783_v30 = vor.u32 %v3290_v26, %v2780_v27  ;;  %1975 = vmatpush.bf16.msrb.mxu3 %v3059_v55  ;;  %v2764_v54 = vld [vmem:[%s5086_s3 + $0x138] sm:$0xf0]  ;;  %v2820_v55 = vld [vmem:[%s5086_s3 + $0x1a8] sm:$0xf0] }
  0xe1   :  { %1911 = vmatmul.bf16.vlgmr.msra.gmra.mxu2 %v4709_v57  ;;  %v1082_v6 = vmul.f32 0.5, %v1074_v61  ;;  %v2767_v58 = vor.u32 %v3286_v52, %v2764_v54  ;;  %v3304_v61 = vld [vmem:[%s5086_s3 + $0x1c4] sm:$0xf] }
  0xe2   :  { %1999 = vmatpush.bf16.msra.mxu1 %v2695_v49  ;;  %v928_v0 = vpop.f32.mrf.mxu0 }
  0xe3   :  { %1987 = vmatpush.bf16.msra.mxu0 %v2623_v41  ;;  %v929_v4 = vadd.f32 %v928_v0, %v163_v47  ;;  %2007 = vmatpush.bf16.msra.mxu2 %v2799_v63  ;;  %v1090_v15 = vmul.f32 %v1082_v6, %v4589_v42  ;;  %v2676_v42 = vld [vmem:[%s5086_s3 + $0x88] sm:$0xf0]  ;;  %v3288_v41 = vld [vmem:[%s5086_s3 + $0x144] sm:$0xf]  ;;  %v3306_v47 = vld [vmem:[%s5086_s3 + $0x1d4] sm:$0xf] }
  0xe4   :  { %v2679_v22 = vor.u32 %v3264_v20, %v2676_v42  ;;  %v2775_v45 = vor.u32 %v3288_v41, %v2772_v43  ;;  %v2847_v50 = vor.u32 %v3306_v47, %v2844_v48  ;;  %v2828_v6 = vld [vmem:[%s5086_s3 + $0x1b8] sm:$0xf0]  ;;  %v2823_v20 = vor.u32 %v3300_v17, %v2820_v55  ;;  %v3322_v43 = vld [vmem:[%s5086_s3 + $0x254] sm:$0xf]  ;;  %v2804_v47 = vld [vmem:[%s5086_s3 + $0x188] sm:$0xf0] }
  0xe5   :  { %v941_v5 = vpop.f32.mrf.mxu1  ;;  %v4757_v21 = vpack.c.bf16 %v1090_v15, %v1090_v15  ;;  %v3326_v15 = vld [vmem:[%s5086_s3 + $0x274] sm:$0xf]  ;;  %v165_v42 = vperm.slane %v4300_v53, 6  ;;  %v2988_v41 = vld [vmem:[%s5086_s3 + $0x2f8] sm:$0xf0]  ;;  %v166_v48 = vperm.slane %v4300_v53, 7 }
  0xe6   :  { %v4739_v13 = vadd.f32 %v941_v5, %v929_v4  ;;  %2000 = vmatpush.bf16.msra.mxu1 %v2687_v9  ;;  %v3302_v5 = vld [vmem:[%s5086_s3 + $0x1b4] sm:$0xf]  ;;  %v2980_v53 = vld [vmem:[%s5086_s3 + $0x2e8] sm:$0xf0] }
  0xe7   :  { %1988 = vmatpush.bf16.msra.mxu0 %v2615_v62  ;;  %2008 = vmatpush.bf16.msra.mxu2 %v2791_v16  ;;  %v2836_v62 = vld [vmem:[%s5086_s3 + $0x1c8] sm:$0xf0]  ;;  %v2831_v8 = vor.u32 %v3302_v5, %v2828_v6  ;;  %v2751_v16 = vor.u32 %v3282_v11, %v2748_v12  ;;  %v3338_v6 = vld [vmem:[%s5086_s3 + $0x2d4] sm:$0xf]  ;;  %v2892_v11 = vld [vmem:[%s5086_s3 + $0x238] sm:$0xf0] }
  0xe8   :  { %v1027_v56 = vmul.f32 %v4739_v13, %v4739_v13  ;;  %v954_v29 = vpop.f32.mrf.mxu2  ;;  %1924 = vmatmul.bf16.vlgmr.msra.gmra.mxu3 %v4757_v21  ;;  %v2839_v63 = vor.u32 %v3304_v61, %v2836_v62  ;;  %v2900_v61 = vld [vmem:[%s5086_s3 + $0x248] sm:$0xf0] }
  0xe9   :  { %v955_v31 = vadd.f32 %v954_v29, %v164_v19  ;;  %2020 = vmatpush.bf16.msra.mxu3 %v2863_v25  ;;  %v2924_v19 = vld [vmem:[%s5086_s3 + $0x278] sm:$0xf0]  ;;  %v3324_v25 = vld [vmem:[%s5086_s3 + $0x264] sm:$0xf]  ;;  %v3298_v29 = vld [vmem:[%s5086_s3 + $0x194] sm:$0xf] }
  0xea   :  { %v1035_v28 = vmul.f32 %v1027_v56, %v4739_v13  ;;  %v930_v34 = vpop.f32.mrf.mxu0  ;;  %2001 = vmatpush.bf16.msra.mxu1 %v2679_v22  ;;  %v3280_v22 = vld [vmem:[%s5086_s3 + $0x104] sm:$0xf]  ;;  %v2927_v24 = vor.u32 %v3326_v15, %v2924_v19  ;;  %v2964_v55 = vld [vmem:[%s5086_s3 + $0x2c8] sm:$0xf0] }
  0xeb   :  { %v967_v32 = vpop.f32.mrf.mxu3  ;;  %2009 = vmatpush.bf16.msra.mxu2 %v2783_v30  ;;  %v2743_v26 = vor.u32 %v3280_v22, %v2740_v23  ;;  %v2812_v30 = vld [vmem:[%s5086_s3 + $0x198] sm:$0xf0]  ;;  %v3336_v19 = vld [vmem:[%s5086_s3 + $0x2c4] sm:$0xf] }
  0xec   :  { %v1043_v37 = vmul.f32 0.044715, %v1035_v28  ;;  %v4779_v40 = vadd.f32 %v967_v32, %v955_v31  ;;  %v2815_v34 = vor.u32 %v3298_v29, %v2812_v30  ;;  %v3314_v29 = vld [vmem:[%s5086_s3 + $0x214] sm:$0xf] }
  0xed   :  { %v943_v38 = vpop.f32.mrf.mxu1  ;;  %2021 = vmatpush.bf16.msra.mxu3 %v2855_v39 }
  0xee   :  { %v1051_v44 = vadd.f32 %v1043_v37, %v4739_v13  ;;  %v1028_v46 = vmul.f32 %v4779_v40, %v4779_v40  ;;  %v3342_v37 = vld [vmem:[%s5086_s3 + $0x2f4] sm:$0xf] }
  0xef   :  { %2010 = vmatpush.bf16.msra.mxu2 %v2775_v45  ;;  %v2908_v45 = vld [vmem:[%s5086_s3 + $0x258] sm:$0xf0]  ;;  %v2991_v52 = vor.u32 %v3342_v37, %v2988_v41 }
  0xf0   :  { %v1059_v49 = vmul.f32 0.7978846, %v1051_v44  ;;  %v1036_v14 = vmul.f32 %v1028_v46, %v4779_v40  ;;  %v956_v10 = vpop.f32.mrf.mxu2  ;;  %v3296_v46 = vld [vmem:[%s5086_s3 + $0x184] sm:$0xf] }
  0xf1   :  { %2022 = vmatpush.bf16.msra.mxu3 %v2847_v50  ;;  %v2807_v50 = vor.u32 %v3296_v46, %v2804_v47  ;;  %v2911_v10 = vor.u32 %v3322_v43, %v2908_v45  ;;  %v3358_v43 = vld [vmem:[%s5086_s3 + $0x374] sm:$0xf]  ;;  %v3052_v45 = vld [vmem:[%s5086_s3 + $0x378] sm:$0xf0] }
  0xf2   :  { %3384 = vtanh.f32 %v1059_v49  ;;  %v1044_v59 = vmul.f32 0.044715, %v1036_v14 }
  0xf3   :  { %v969_v60 = vpop.f32.mrf.mxu3  ;;  %2011 = vmatpush.bf16.msra.mxu2 %v2767_v58  ;;  %v3340_v58 = vld [vmem:[%s5086_s3 + $0x2e4] sm:$0xf] }
  0xf4   :  { %v1052_v0 = vadd.f32 %v1044_v59, %v4779_v40  ;;  %v3320_v60 = vld [vmem:[%s5086_s3 + $0x244] sm:$0xf] }
  0xf5   :  { %2023 = vmatpush.bf16.msra.mxu3 %v2839_v63  ;;  %v2903_v5 = vor.u32 %v3320_v60, %v2900_v61 }
  0xf6   :  { %v1060_v4 = vmul.f32 0.7978846, %v1052_v0 }
  0xf7   :  { %2012 = vmatpush.bf16.msra.mxu2 %v2759_v3  ;;  %v2983_v3 = vor.u32 %v3340_v58, %v2980_v53 }
  0xf8   :  { %v3385_v7 = vpop.eup %3384  ;;  %3386 = vtanh.f32 %v1060_v4 }
  0xf9   :  { %v1075_v9 = vadd.f32 1.0, %v3385_v7  ;;  %2024 = vmatpush.bf16.msra.mxu3 %v2831_v8  ;;  %v2972_v7 = vld [vmem:[%s5086_s3 + $0x2d8] sm:$0xf0] }
  0xfb   :  { %v1083_v18 = vmul.f32 0.5, %v1075_v9  ;;  %2013 = vmatpush.bf16.msra.mxu2 %v2751_v16  ;;  %v3318_v9 = vld [vmem:[%s5086_s3 + $0x234] sm:$0xf]  ;;  %v2975_v16 = vor.u32 %v3338_v6, %v2972_v7 }
  0xfd   :  { %v1091_v56 = vmul.f32 %v1083_v18, %v4739_v13  ;;  %v2916_v13 = vld [vmem:[%s5086_s3 + $0x268] sm:$0xf0]  ;;  %2025 = vmatpush.bf16.msra.mxu3 %v2823_v20  ;;  %v2895_v18 = vor.u32 %v3318_v9, %v2892_v11  ;;  %v3352_v11 = vld [vmem:[%s5086_s3 + $0x344] sm:$0xf] }
  0xfe   :  { %v3387_v27 = vpop.eup %3386  ;;  %v2919_v38 = vor.u32 %v3324_v25, %v2916_v13  ;;  %v2956_v13 = vld [vmem:[%s5086_s3 + $0x2b8] sm:$0xf0]  ;;  %v3108_v9 = vld [vmem:[%s5086_s3 + $0x3e8] sm:$0xf0] }
  0xff   :  { %v4851_v28 = vpack.c.bf16 %v1091_v56, %v1091_v56  ;;  %v1076_v32 = vadd.f32 1.0, %v3387_v27  ;;  %2014 = vmatpush.bf16.msra.mxu2 %v2743_v26  ;;  %v2884_v56 = vld [vmem:[%s5086_s3 + $0x228] sm:$0xf0]  ;;  %v3334_v27 = vld [vmem:[%s5086_s3 + $0x2b4] sm:$0xf] }
 0x101   :  { %1937 = vmatmul.bf16.vlgmr.msrb.gmra.mxu0 %v4851_v28  ;;  %v1084_v39 = vmul.f32 0.5, %v1076_v32  ;;  %2026 = vmatpush.bf16.msra.mxu3 %v2815_v34  ;;  %v2959_v32 = vor.u32 %v3334_v27, %v2956_v13  ;;  %v3004_v27 = vld [vmem:[%s5086_s3 + $0x318] sm:$0xf0] }
 0x102   :  { %v980_v31 = vpop.f32.mrf.mxu0  ;;  %2033 = vmatpush.bf16.msrb.mxu0 %v2927_v24  ;;  %v2967_v24 = vor.u32 %v3336_v19, %v2964_v55 }
 0x103   :  { %v981_v35 = vadd.f32 %v980_v31, %v165_v42  ;;  %v993_v36 = vpop.f32.mrf.mxu1  ;;  %v1092_v49 = vmul.f32 %v1084_v39, %v4779_v40  ;;  %v3316_v42 = vld [vmem:[%s5086_s3 + $0x224] sm:$0xf]  ;;  %v2868_v39 = vld [vmem:[%s5086_s3 + $0x208] sm:$0xf0] }
 0x104   :  { %v2887_v26 = vor.u32 %v3316_v42, %v2884_v56  ;;  %v3348_v42 = vld [vmem:[%s5086_s3 + $0x324] sm:$0xf]  ;;  %v3012_v56 = vld [vmem:[%s5086_s3 + $0x328] sm:$0xf0] }
 0x105   :  { %v4872_v44 = vadd.f32 %v993_v36, %v981_v35  ;;  %v4887_v54 = vpack.c.bf16 %v1092_v49, %v1092_v49  ;;  %2027 = vmatpush.bf16.msra.mxu3 %v2807_v50  ;;  %v3332_v35 = vld [vmem:[%s5086_s3 + $0x2a4] sm:$0xf]  ;;  %v2948_v36 = vld [vmem:[%s5086_s3 + $0x2a8] sm:$0xf0]  ;;  %v3330_v49 = vld [vmem:[%s5086_s3 + $0x294] sm:$0xf]  ;;  %v3055_v50 = vor.u32 %v3358_v43, %v3052_v45 }
 0x106   :  { %2034 = vmatpush.bf16.msrb.mxu0 %v2919_v38  ;;  %v3312_v38 = vld [vmem:[%s5086_s3 + $0x204] sm:$0xf]  ;;  %v2951_v46 = vor.u32 %v3332_v35, %v2948_v36  ;;  %v3362_v35 = vld [vmem:[%s5086_s3 + $0x394] sm:$0xf]  ;;  %v3068_v36 = vld [vmem:[%s5086_s3 + $0x398] sm:$0xf0] }
 0x107   :  { %v1029_v14 = vmul.f32 %v4872_v44, %v4872_v44  ;;  %1950 = vmatmul.bf16.vlgmr.msrb.gmra.mxu1 %v4887_v54 }
 0x108   :  { %v1006_v59 = vpop.f32.mrf.mxu2  ;;  %2046 = vmatpush.bf16.msrb.mxu1 %v2991_v52 }
 0x109   :  { %v1037_v40 = vmul.f32 %v1029_v14, %v4872_v44  ;;  %v1007_v62 = vadd.f32 %v1006_v59, %v166_v48  ;;  %v2871_v48 = vor.u32 %v3312_v38, %v2868_v39  ;;  %v2932_v59 = vld [vmem:[%s5086_s3 + $0x288] sm:$0xf0]  ;;  %v3360_v38 = vld [vmem:[%s5086_s3 + $0x384] sm:$0xf] }
 0x10a   :  { %v1019_v63 = vpop.f32.mrf.mxu3  ;;  %v982_v0 = vpop.f32.mrf.mxu0  ;;  %2035 = vmatpush.bf16.msrb.mxu0 %v2911_v10  ;;  %v3356_v10 = vld [vmem:[%s5086_s3 + $0x364] sm:$0xf] }
 0x10b   :  { %v1045_v1 = vmul.f32 0.044715, %v1037_v40  ;;  %v995_v2 = vpop.f32.mrf.mxu1  ;;  %v4903_v4 = vadd.f32 %v1019_v63, %v1007_v62  ;;  %v3328_v40 = vld [vmem:[%s5086_s3 + $0x284] sm:$0xf]  ;;  %v3374_v62 = vld [vmem:[%s5086_s3 + $0x3f4] sm:$0xf] }
 0x10c   :  { %2047 = vmatpush.bf16.msrb.mxu1 %v2983_v3  ;;  %v3116_v63 = vld [vmem:[%s5086_s3 + $0x3f8] sm:$0xf0]  ;;  %v3354_v0 = vld [vmem:[%s5086_s3 + $0x354] sm:$0xf]  ;;  %v2935_v3 = vor.u32 %v3328_v40, %v2932_v59 }
 0x10d   :  { %v1053_v8 = vadd.f32 %v1045_v1, %v4872_v44  ;;  %v1030_v12 = vmul.f32 %v4903_v4, %v4903_v4  ;;  %v3036_v1 = vld [vmem:[%s5086_s3 + $0x358] sm:$0xf0] }
 0x10e   :  { %2036 = vmatpush.bf16.msrb.mxu0 %v2903_v5  ;;  %v3119_v5 = vor.u32 %v3374_v62, %v3116_v63  ;;  %v3039_v7 = vor.u32 %v3354_v0, %v3036_v1 }
 0x10f   :  { %v1061_v15 = vmul.f32 0.7978846, %v1053_v8  ;;  %v1038_v17 = vmul.f32 %v1030_v12, %v4903_v4  ;;  %v3372_v8 = vld [vmem:[%s5086_s3 + $0x3e4] sm:$0xf] }
 0x110   :  { %v1008_v20 = vpop.f32.mrf.mxu2  ;;  %2048 = vmatpush.bf16.msrb.mxu1 %v2975_v16  ;;  %v3100_v16 = vld [vmem:[%s5086_s3 + $0x3d8] sm:$0xf0] }
 0x111   :  { %3388 = vtanh.f32 %v1061_v15  ;;  %v1046_v22 = vmul.f32 0.044715, %v1038_v17  ;;  %1989 = vmatmul.bf16.vlgmr.msra.gmra.mxu0 %v4504_v51  ;;  %v2876_v51 = vld [vmem:[%s5086_s3 + $0x218] sm:$0xf0]  ;;  %v3370_v15 = vld [vmem:[%s5086_s3 + $0x3d4] sm:$0xf] }
 0x112   :  { %v1021_v23 = vpop.f32.mrf.mxu3  ;;  %2037 = vmatpush.bf16.msrb.mxu0 %v2895_v18  ;;  %v2879_v34 = vor.u32 %v3314_v29, %v2876_v51  ;;  %v3350_v17 = vld [vmem:[%s5086_s3 + $0x334] sm:$0xf]  ;;  %v3020_v18 = vld [vmem:[%s5086_s3 + $0x338] sm:$0xf0]  ;;  %v3103_v19 = vor.u32 %v3370_v15, %v3100_v16  ;;  %v3368_v20 = vld [vmem:[%s5086_s3 + $0x3c4] sm:$0xf] }
 0x113   :  { %v1054_v25 = vadd.f32 %v1046_v22, %v4903_v4  ;;  %v3023_v55 = vor.u32 %v3350_v17, %v3020_v18  ;;  %v3015_v23 = vor.u32 %v3348_v42, %v3012_v56  ;;  %v3364_v29 = vld [vmem:[%s5086_s3 + $0x3a4] sm:$0xf]  ;;  %v3076_v51 = vld [vmem:[%s5086_s3 + $0x3a8] sm:$0xf0] }
 0x114   :  { %2049 = vmatpush.bf16.msrb.mxu1 %v2967_v24  ;;  %v3366_v24 = vld [vmem:[%s5086_s3 + $0x3b4] sm:$0xf] }
 0x115   :  { %v1062_v30 = vmul.f32 0.7978846, %v1054_v25  ;;  %v3084_v25 = vld [vmem:[%s5086_s3 + $0x3b8] sm:$0xf0] }
 0x116   :  { %2038 = vmatpush.bf16.msrb.mxu0 %v2887_v26  ;;  %v3346_v26 = vld [vmem:[%s5086_s3 + $0x314] sm:$0xf] }
 0x117   :  { %v3389_v31 = vpop.eup %3388  ;;  %3390 = vtanh.f32 %v1062_v30  ;;  %2002 = vmatmul.bf16.vlgmr.msra.gmra.mxu1 %v4544_v33  ;;  %v2940_v33 = vld [vmem:[%s5086_s3 + $0x298] sm:$0xf0]  ;;  %v3007_v13 = vor.u32 %v3346_v26, %v3004_v27  ;;  %v3344_v30 = vld [vmem:[%s5086_s3 + $0x304] sm:$0xf] }
 0x118   :  { %v1077_v37 = vadd.f32 1.0, %v3389_v31  ;;  %2050 = vmatpush.bf16.msrb.mxu1 %v2959_v32  ;;  %v2943_v58 = vor.u32 %v3330_v49, %v2940_v33  ;;  %v2996_v31 = vld [vmem:[%s5086_s3 + $0x308] sm:$0xf0]  ;;  %v3079_v32 = vor.u32 %v3364_v29, %v3076_v51 }
 0x11a   :  { %v1085_v41 = vmul.f32 0.5, %v1077_v37  ;;  %2039 = vmatpush.bf16.msrb.mxu0 %v2879_v34  ;;  %v2999_v34 = vor.u32 %v3344_v30, %v2996_v31  ;;  %v3071_v37 = vor.u32 %v3362_v35, %v3068_v36 }
 0x11c   :  { %v1093_v47 = vmul.f32 %v1085_v41, %v4872_v44  ;;  %v3044_v44 = vld [vmem:[%s5086_s3 + $0x368] sm:$0xf0]  ;;  %2051 = vmatpush.bf16.msrb.mxu1 %v2951_v46  ;;  %v1231_v41 = vld [vmem:[%s5088_s4] sm:$0x3] }
 0x11d   :  { %v3391_v14 = vpop.eup %3390  ;;  %v3047_v60 = vor.u32 %v3356_v10, %v3044_v44  ;;  %v1233_v43 = vperm.slane %v1231_v41, 0 }
 0x11e   :  { %v4973_v52 = vpack.c.bf16 %v1093_v47, %v1093_v47  ;;  %v1078_v53 = vadd.f32 1.0, %v3391_v14  ;;  %2040 = vmatpush.bf16.msrb.mxu0 %v2871_v48 }
 0x120   :  { %1963 = vmatmul.bf16.vlgmr.msrb.gmra.mxu2 %v4973_v52  ;;  %v1086_v61 = vmul.f32 0.5, %v1078_v53  ;;  %2052 = vmatpush.bf16.msrb.mxu1 %v2943_v58 }
 0x121   :  { %2059 = vmatpush.bf16.msrb.mxu2 %v3055_v50  ;;  %2041 = vmatmul.bf16.vlgmr.msrb.gmra.mxu0 %v4851_v28  ;;  %v3028_v28 = vld [vmem:[%s5086_s3 + $0x348] sm:$0xf0] }
 0x122   :  { %v1094_v2 = vmul.f32 %v1086_v61, %v4903_v4  ;;  %v3111_v4 = vor.u32 %v3372_v8, %v3108_v9  ;;  %v3031_v12 = vor.u32 %v3352_v11, %v3028_v28 }
 0x124   :  { %v1102_v6 = vpack.c.bf16 %v1094_v2, %v1094_v2  ;;  %2053 = vmatpush.bf16.msrb.mxu1 %v2935_v3 }
 0x125   :  { %2060 = vmatpush.bf16.msrb.mxu2 %v3047_v60 }
 0x126   :  { %1976 = vmatmul.bf16.vlgmr.msrb.gmra.mxu3 %v1102_v6 }
 0x127   :  { %2072 = vmatpush.bf16.msrb.mxu3 %v3119_v5  ;;  %2054 = vmatmul.bf16.vlgmr.msrb.gmra.mxu1 %v4887_v54  ;;  %v3092_v54 = vld [vmem:[%s5086_s3 + $0x3c8] sm:$0xf0] }
 0x128   :  { %v3095_v22 = vor.u32 %v3368_v20, %v3092_v54 }
 0x129   :  { %2061 = vmatpush.bf16.msrb.mxu2 %v3039_v7 }
 0x12b   :  { %2073 = vmatpush.bf16.msrb.mxu3 %v3111_v4 }
 0x12d   :  { %2062 = vmatpush.bf16.msrb.mxu2 %v3031_v12  ;;  %v1234_v12 = vperm.slane %v1231_v41, 1 }
 0x12f   :  { %2074 = vmatpush.bf16.msrb.mxu3 %v3103_v19 }
 0x130   :  { %2015 = vmatmul.bf16.vlgmr.msra.gmra.mxu2 %v4709_v57  ;;  %v3087_v57 = vor.u32 %v3366_v24, %v3084_v25 }
 0x131   :  { %2063 = vmatpush.bf16.msrb.mxu2 %v3023_v55 }
 0x133   :  { %2075 = vmatpush.bf16.msrb.mxu3 %v3095_v22 }
 0x135   :  { %2064 = vmatpush.bf16.msrb.mxu2 %v3015_v23 }
 0x136   :  { %2028 = vmatmul.bf16.vlgmr.msra.gmra.mxu3 %v4757_v21  ;;  %v3060_v21 = vld [vmem:[%s5086_s3 + $0x388] sm:$0xf0] }
 0x137   :  { %2076 = vmatpush.bf16.msrb.mxu3 %v3087_v57  ;;  %v3063_v39 = vor.u32 %v3360_v38, %v3060_v21 }
 0x139   :  { %2065 = vmatpush.bf16.msrb.mxu2 %v3007_v13 }
 0x13b   :  { %2077 = vmatpush.bf16.msrb.mxu3 %v3079_v32 }
 0x13d   :  { %2066 = vmatpush.bf16.msrb.mxu2 %v2999_v34 }
 0x13f   :  { %2078 = vmatpush.bf16.msrb.mxu3 %v3071_v37 }
 0x140   :  { %2067 = vmatmul.bf16.vlgmr.msrb.gmra.mxu2 %v4973_v52 }
 0x143   :  { %2079 = vmatpush.bf16.msrb.mxu3 %v3063_v39 }
 0x145   :  { %v1886_v45 = vpop.f32.mrf.mxu0 }
 0x146   :  { %2080 = vmatmul.bf16.vlgmr.msrb.gmra.mxu3 %v1102_v6  ;;  %v1887_v46 = vadd.f32 %v1886_v45, %v1233_v43 }
 0x14a   :  { %v1899_v47 = vpop.f32.mrf.mxu1 }
 0x14b   :  { %v1900_v48 = vadd.f32 %v1899_v47, %v1887_v46 }
 0x14d   :  { %v1888_v49 = vpop.f32.mrf.mxu0 }
 0x152   :  { %v1901_v33 = vpop.f32.mrf.mxu1 }
 0x164   :  { %v1912_v50 = vpop.f32.mrf.mxu2 }
 0x165   :  { %v1913_v14 = vadd.f32 %v1912_v50, %v1900_v48 }
 0x16b   :  { %v1925_v10 = vpop.f32.mrf.mxu3 }
 0x16c   :  { %v1926_v44 = vadd.f32 %v1925_v10, %v1913_v14  ;;  %v1914_v58 = vpop.f32.mrf.mxu2 }
 0x173   :  { %v1927_v52 = vpop.f32.mrf.mxu3 }
 0x17e   :  { %v1938_v53 = vpop.f32.mrf.mxu0 }
 0x17f   :  { %v1939_v40 = vadd.f32 %v1938_v53, %v1926_v44 }
 0x184   :  { %v1951_v59 = vpop.f32.mrf.mxu1 }
 0x185   :  { %v1952_v60 = vadd.f32 %v1951_v59, %v1939_v40 }
 0x186   :  { %v1940_v61 = vpop.f32.mrf.mxu0 }
 0x18c   :  { %v1953_v62 = vpop.f32.mrf.mxu1 }
 0x18e   :  { %v1990_v63 = vpop.f32.mrf.mxu0 }
 0x18f   :  { %v1991_v15 = vadd.f32 %v1990_v63, %v1234_v12 }
 0x194   :  { %v2003_v0 = vpop.f32.mrf.mxu1 }
 0x195   :  { %v2004_v17 = vadd.f32 %v2003_v0, %v1991_v15 }
 0x196   :  { %v1992_v1 = vpop.f32.mrf.mxu0 }
 0x19c   :  { %v2005_v2 = vpop.f32.mrf.mxu1 }
 0x19e   :  { %v2042_v3 = vpop.f32.mrf.mxu0 }
 0x1a3   :  { %v1964_v5 = vpop.f32.mrf.mxu2 }
 0x1a4   :  { %v2055_v6 = vpop.f32.mrf.mxu1  ;;  %v1965_v24 = vadd.f32 %v1964_v5, %v1952_v60 }
 0x1a6   :  { %v2044_v7 = vpop.f32.mrf.mxu0 }
 0x1a9   :  { %v1977_v8 = vpop.f32.mrf.mxu3 }
 0x1aa   :  { %v1978_v27 = vadd.f32 %v1977_v8, %v1965_v24 }
 0x1ab   :  { %v1966_v9 = vpop.f32.mrf.mxu2 }
 0x1ac   :  { %v2057_v11 = vpop.f32.mrf.mxu1 }
 0x1b1   :  { %v1979_v28 = vpop.f32.mrf.mxu3 }
 0x1b3   :  { %v2016_v4 = vpop.f32.mrf.mxu2 }
 0x1b4   :  { %v2017_v19 = vadd.f32 %v2016_v4, %v2004_v17 }
 0x1b9   :  { %v2029_v16 = vpop.f32.mrf.mxu3 }
 0x1ba   :  { %v2030_v55 = vadd.f32 %v2029_v16, %v2017_v19 }
 0x1bb   :  { %v2018_v18 = vpop.f32.mrf.mxu2 }
 0x1bc   :  { %v2043_v54 = vadd.f32 %v2042_v3, %v2030_v55 }
 0x1be   :  { %v2056_v56 = vadd.f32 %v2055_v6, %v2043_v54 }
 0x1c1   :  { %v2031_v20 = vpop.f32.mrf.mxu3 }
 0x1c3   :  { %v2068_v42 = vpop.f32.mrf.mxu2 }
 0x1c4   :  { %v2069_v22 = vadd.f32 %v2068_v42, %v2056_v56 }
 0x1c9   :  { %v2081_v23 = vpop.f32.mrf.mxu3 }
 0x1ca   :  { %v2082_v25 = vadd.f32 %v2081_v23, %v2069_v22 }
 0x1cb   :  { %v2070_v26 = vpop.f32.mrf.mxu2 }
 0x1cc   :  { %v2087_v57 = vrot.slane %v2082_v25, 6 }
 0x1ce   :  { %v2089_v13 = vsel %vm2088_vm0, %v1978_v27, %v2087_v57 }
 0x1cf   :  { %2091 = vst [vmem:[%s5089_s5] sm:$0xf] %v2089_v13 }
 0x1d1   :  { %v2083_v29 = vpop.f32.mrf.mxu3 }

</bundles_post_ra>
